<compile_context>
chip_gen: v5e
topology: v5e:2x2
jax: 0.10.0
libtpu: 0.0.40
codegen_flags: <defaults>
</compile_context>

<pallas_src>
import functools

import numpy as np
import jax
import jax.numpy as jnp
from jax import lax
from jax.experimental import pallas as pl
from jax.experimental.pallas import tpu as pltpu


def _round_up(x, m):
    return (x + m - 1) // m * m


def _gru_chunk_kernel(lens_ref, whh_ref, bhn_ref, *refs,
                      ndir, hidden, chunk, nchunks, unroll):
    """Direction-interleaved GRU recurrence over one time chunk.

    Grid = (nchunks,), marked "arbitrary" (serial: h carries across chunks).

    lens_ref : (Bp, 1) int32      sequence lengths (padded batch rows carry 0)
    whh_ref  : (ndir, H, GP) f32  hidden->gates weights, packed gate columns
    bhn_ref  : (ndir, 1, H) f32   b_hn (must stay inside r * (.))
    refs     : gi_d  (chunk, Bp, GP) f32   for each direction     [inputs]
               out_d (chunk, Bp, H)  f32   for each direction     [outputs]
               h_scr (ndir, Bp, H)   f32   cross-chunk h carry    [scratch]
    """
    H, TC = hidden, chunk
    gi_refs = refs[:ndir]
    out_refs = refs[ndir:2 * ndir]
    h_scr = refs[2 * ndir]

    c = pl.program_id(0)

    @pl.when(c == 0)
    def _():
        h_scr[...] = jnp.zeros_like(h_scr)

    # ---- loop-invariant hoists (weights, biases, lengths, h load) ----
    lens = lens_ref[...]                                    # (Bp, 1) int32
    Bp = lens.shape[0]
    whh = [whh_ref[d] for d in range(ndir)]                 # (H, GP) each
    bhn = [jnp.broadcast_to(bhn_ref[d], (Bp, H)) for d in range(ndir)]
    h0 = tuple(h_scr[d] for d in range(ndir))               # (Bp, H) each

    # Global time of local index 0 for each direction; the backward direction
    # walks chunks in reverse (its BlockSpec selects block nchunks-1-c).
    t0 = [c * TC, (nchunks - 1 - c) * TC]

    def cell(gi, h_prev, whh_d, bhn_d, t):
        # TODO(synk): pltpu.matmul_push_rhs once per direction; per-step
        #             matmul_acc_lhs/matmul_pop to avoid re-streaming W_hh.
        gh = jnp.dot(h_prev, whh_d, preferred_element_type=jnp.float32)
        r = jax.nn.sigmoid(gi[:, 0:H] + gh[:, 0:H])
        z = jax.nn.sigmoid(gi[:, H:2 * H] + gh[:, H:2 * H])
        n = jnp.tanh(gi[:, 2 * H:3 * H] + r * (gh[:, 2 * H:3 * H] + bhn_d))
        h_new = (1.0 - z) * n + z * h_prev                  # (Bp, H)
        valid = t < lens                                    # (Bp, 1) bool
        # packed-sequence semantics: state only advances on valid steps,
        # padded output positions are exactly zero.
        return jnp.where(valid, h_new, h_prev), jnp.where(valid, h_new, 0.0)

    def body(s, hs):
        new_hs = []
        for d in range(ndir):                 # python loop -> interleaved code
            local = s if d == 0 else TC - 1 - s   # bwd runs the chunk reversed
            gi = gi_refs[d][local]                           # (Bp, GP)
            h_next, out = cell(gi, hs[d], whh[d], bhn[d], t0[d] + local)
            out_refs[d][local] = out
            new_hs.append(h_next)
        return tuple(new_hs)

    h_final = lax.fori_loop(0, TC, body, h0, unroll=unroll)
    for d in range(ndir):
        h_scr[d] = h_final[d]


def _prep_direction(wih, whh, bih, bhh, hidden, gp):
    """Repack PyTorch-layout GRU weights into the packed-gate layout.

    Gate g (r=0, z=1, n=2) occupies columns [g*H, (g+1)*H) of a GP-lane block.

    Returns:
      wih_t   (I, GP)   input->gate weights (transposed), zero-padded cols
      whh_t   (H, GP)   hidden->gate weights, same layout
      gi_bias (GP,)     b_ih (all gates) + b_hh (r, z) folded into the hoisted
                        input projection
      bhn     (1, H)    b_hh of the n gate (stays inside r * (...))
    """
    H = hidden
    I = wih.shape[1]
    wih = jnp.asarray(wih, jnp.float32)
    whh = jnp.asarray(whh, jnp.float32)
    bih = jnp.asarray(bih, jnp.float32)
    bhh = jnp.asarray(bhh, jnp.float32)

    wih_t = jnp.zeros((I, gp), jnp.float32).at[:, :3 * H].set(wih.T)
    whh_t = jnp.zeros((H, gp), jnp.float32).at[:, :3 * H].set(whh.T)
    gi_bias = jnp.zeros((gp,), jnp.float32)
    gi_bias = gi_bias.at[:2 * H].set(bih[:2 * H] + bhh[:2 * H])   # r, z biases
    gi_bias = gi_bias.at[2 * H:3 * H].set(bih[2 * H:3 * H])       # b_in
    bhn = bhh[2 * H:3 * H].reshape(1, H)                          # b_hn
    return wih_t, whh_t, gi_bias, bhn


def _gru_layer(x_tm, lens_col, layer_params, hidden, bidirectional, chunk):
    """One (bi)GRU layer. x_tm: (Tp, Bp, I) time-major, Bp % 8 == 0,
    Tp % chunk == 0.  Returns (Tp, Bp, ndir*hidden) float32."""
    Tp, Bp, _ = x_tm.shape
    ndir = 2 if bidirectional else 1
    H = hidden
    GP = max(128, _round_up(3 * H, 128))     # all gates packed in one block
    nchunks = Tp // chunk

    gi_list, whh_list, bhn_list = [], [], []
    for dir_params in layer_params[:ndir]:
        wih_t, whh_t, gi_bias, bhn = _prep_direction(*dir_params, hidden, GP)
        # Hoisted input projection: one big (Tp*Bp, I) x (I, GP) matmul per
        # layer/direction instead of one per timestep.
        gi = jnp.einsum('tbi,ig->tbg', x_tm, wih_t,
                        precision=lax.Precision.HIGHEST,
                        preferred_element_type=jnp.float32) + gi_bias
        gi_list.append(gi)                   # (Tp, Bp, GP)
        whh_list.append(whh_t)
        bhn_list.append(bhn)

    whh_all = jnp.stack(whh_list, axis=0)    # (ndir, H, GP)
    bhn_all = jnp.stack(bhn_list, axis=0)    # (ndir, 1, H)

    if chunk <= 32:
        unroll = True
    elif chunk % 8 == 0:
        unroll = 8
    else:
        unroll = 1
    kernel = functools.partial(_gru_chunk_kernel, ndir=ndir, hidden=H,
                               chunk=chunk, nchunks=nchunks, unroll=unroll)

    fwd_idx = lambda c: (c, 0, 0)
    bwd_idx = lambda c: (nchunks - 1 - c, 0, 0)
    dir_idx = [fwd_idx, bwd_idx]

    gi_specs = [pl.BlockSpec((chunk, Bp, GP), dir_idx[d]) for d in range(ndir)]
    out_specs = [pl.BlockSpec((chunk, Bp, H), dir_idx[d]) for d in range(ndir)]
    out_shapes = [jax.ShapeDtypeStruct((Tp, Bp, H), jnp.float32)
                  for _ in range(ndir)]

    outs = pl.pallas_call(
        kernel,
        out_shape=tuple(out_shapes),
        grid_spec=pltpu.PrefetchScalarGridSpec(
            num_scalar_prefetch=0,
            grid=(nchunks,),
            in_specs=[
                pl.BlockSpec((Bp, 1), lambda c: (0, 0)),            # lens
                pl.BlockSpec((ndir, H, GP), lambda c: (0, 0, 0)),   # W_hh^T
                pl.BlockSpec((ndir, 1, H), lambda c: (0, 0, 0)),    # b_hn
                *gi_specs,                                          # gi per dir
            ],
            out_specs=tuple(out_specs),
            scratch_shapes=[pltpu.VMEM((ndir, Bp, H), jnp.float32)],
        ),
        compiler_params=pltpu.CompilerParams(
            dimension_semantics=("arbitrary",),        # serial: h carries
            vmem_limit_bytes=32 * 1024 * 1024,         # safe on v7x (64 MiB)
        ),
    )(lens_col, whh_all, bhn_all, *gi_list)

    if not isinstance(outs, (tuple, list)):
        outs = (outs,)
    # out is exactly H lanes per direction: no lane padding to strip, just the
    # forward|backward feature concat (matches PyTorch output layout).
    return jnp.concatenate(list(outs), axis=-1)        # (Tp, Bp, ndir*H)


def init_gru_params(key, input_size, hidden_size, num_layers, bidirectional):
    """Deterministic synthetic GRU parameters, PyTorch shapes & init range."""
    num_dir = 2 if bidirectional else 1
    bound = 1.0 / np.sqrt(hidden_size)
    params = []
    for layer in range(num_layers):
        in_sz = input_size if layer == 0 else hidden_size * num_dir
        layer_params = []
        for _ in range(num_dir):
            key, k0, k1, k2, k3 = jax.random.split(key, 5)
            wih = jax.random.uniform(k0, (3 * hidden_size, in_sz),
                                     jnp.float32, -bound, bound)
            whh = jax.random.uniform(k1, (3 * hidden_size, hidden_size),
                                     jnp.float32, -bound, bound)
            bih = jax.random.uniform(k2, (3 * hidden_size,),
                                     jnp.float32, -bound, bound)
            bhh = jax.random.uniform(k3, (3 * hidden_size,),
                                     jnp.float32, -bound, bound)
            layer_params.append((wih, whh, bih, bhh))
        params.append(layer_params)
    return params


def gru_stack(x_bf, lens, params, *, bidirectional):
    """Multi-layer (bi)GRU on batch_first input (B, T, I) with length masking."""
    B, T, _ = x_bf.shape
    hidden = params[0][0][1].shape[1]               # W_hh: (3H, H)
    Bp = _round_up(max(B, 1), 8)                    # sublane-padded batch
    chunk = min(T, 128)                             # time-chunk size
    Tp = _round_up(T, chunk)

    lens_col = jnp.zeros((Bp, 1), jnp.int32).at[:B, 0].set(
        jnp.asarray(lens, jnp.int32))
    x = jnp.asarray(x_bf, jnp.float32)
    x = jnp.pad(x, ((0, Bp - B), (0, Tp - T), (0, 0)))  # pad rows have len 0
    h = jnp.transpose(x, (1, 0, 2))                 # (Tp, Bp, I) time-major

    for layer_params in params:
        h = _gru_layer(h, lens_col, layer_params, hidden, bidirectional, chunk)
        # TODO(synk): inter-layer dropout (train-mode only; dropout=0.0 default)

    out = jnp.transpose(h, (1, 0, 2))               # (Bp, Tp, ndir*H)
    return out[:B, :T]


def gru_w_sort(x, lens, params, *, bidirectional, sort=True,
               allow_zero_length=False):
    """Forward pass of GRUwSort. x: (B, T, I), lens: (B,) ints (host-known)."""
    lens_np = np.asarray(lens).astype(np.int64)
    x = jnp.asarray(x, jnp.float32)

    if sort:
        sort_idx = np.argsort(-lens_np)
        inv_sort_idx = np.argsort(sort_idx)
        x = x[jnp.asarray(sort_idx)]
        lens_np = lens_np[sort_idx]

    zero_num = 0
    if allow_zero_length:
        # NOTE: like the original module, this assumes zero-length rows sit at
        # the end (guaranteed only when sort=True).
        zero_num = int(np.sum(lens_np == 0))
        if zero_num > 0:
            x = x[:-zero_num]
            lens_np = lens_np[:-zero_num]

    # pad_packed_sequence returns sequences trimmed to max(lens)
    max_len = int(lens_np.max())
    x = x[:, :max_len]

    out = gru_stack(x, lens_np, params, bidirectional=bidirectional)

    if allow_zero_length and zero_num > 0:
        padding = jnp.zeros((zero_num, out.shape[1], out.shape[2]), out.dtype)
        out = jnp.concatenate([out, padding], axis=0)

    if sort:
        out = out[jnp.asarray(inv_sort_idx)]
    return out


def _gru_ref(x_bf, lens, params, *, bidirectional):
    """Pure-JAX lax.scan reference with identical packed-sequence masking."""
    ndir = 2 if bidirectional else 1
    x = jnp.asarray(x_bf, jnp.float32)
    lens = jnp.asarray(lens, jnp.int32)
    T = x.shape[1]
    h_in = jnp.transpose(x, (1, 0, 2))              # (T, B, I)

    def run_dir(inp, wih, whh, bih, bhh, reverse):
        H = whh.shape[1]

        def cell(h, xt_t):
            xt, t = xt_t
            gi = jnp.dot(xt, wih.T, precision=lax.Precision.HIGHEST) + bih
            gh = jnp.dot(h, whh.T, precision=lax.Precision.HIGHEST) + bhh
            r = jax.nn.sigmoid(gi[:, :H] + gh[:, :H])
            z = jax.nn.sigmoid(gi[:, H:2 * H] + gh[:, H:2 * H])
            n = jnp.tanh(gi[:, 2 * H:] + r * gh[:, 2 * H:])
            h_new = (1.0 - z) * n + z * h
            valid = (t < lens)[:, None]
            return jnp.where(valid, h_new, h), jnp.where(valid, h_new, 0.0)

        ts = jnp.arange(T)
        xs = (inp[::-1], ts[::-1]) if reverse else (inp, ts)
        h0 = jnp.zeros((inp.shape[1], H), jnp.float32)
        _, outs = lax.scan(cell, h0, xs)
        return outs[::-1] if reverse else outs

    for layer_params in params:
        outs = [run_dir(h_in, *layer_params[d], reverse=(d == 1))
                for d in range(ndir)]
        h_in = jnp.concatenate(outs, axis=-1)
    return jnp.transpose(h_in, (1, 0, 2))           # (B, T, ndir*H)


if __name__ == "__main__":
    # Module config: GRUwSort(input_size=16, hidden_size=32, num_layers=2,
    #                         batch_first=True, bidirectional=True, sort=True)
    B, T, I, H = 4, 8, 16, 32
    num_layers, bidirectional = 2, True

    key = jax.random.PRNGKey(0)
    kx, kp = jax.random.split(key)
    x = jax.random.normal(kx, (B, T, I), jnp.float32)
    lens = np.array([5, 8, 3, 6], dtype=np.int32)   # max == T

    params = init_gru_params(kp, I, H, num_layers, bidirectional)

    out = gru_w_sort(x, lens, params, bidirectional=bidirectional, sort=True,
                     allow_zero_length=False)
    out = jax.block_until_ready(out)

    num_dir = 2 if bidirectional else 1
    assert out.shape == (B, int(lens.max()), num_dir * H), out.shape

    out_np = np.asarray(out)
    for b in range(B):
        # pad_packed_sequence pads with zeros beyond each sequence length
        assert np.allclose(out_np[b, lens[b]:], 0.0)
        assert np.any(np.abs(out_np[b, :lens[b]]) > 0.0)

    # Cross-check the Pallas kernel against a pure-JAX lax.scan GRU reference.
    ref = _gru_ref(x[:, :int(lens.max())], lens, params,
                   bidirectional=bidirectional)
    np.testing.assert_allclose(out_np, np.asarray(ref), rtol=2e-3, atol=2e-3)

    print("KERNEL_OK")
</pallas_src>

<mosaic_0001>
module attributes {stable_mosaic.version = 11 : i64} {
  func.func @_gru_chunk_kernel(%arg0: i32, %arg1: memref<8x1xi32, #tpu.memory_space<vmem>>, %arg2: memref<2x32x128xf32, #tpu.memory_space<vmem>>, %arg3: memref<2x1x32xf32, #tpu.memory_space<vmem>>, %arg4: memref<8x8x128xf32, #tpu.memory_space<vmem>>, %arg5: memref<8x8x128xf32, #tpu.memory_space<vmem>>, %arg6: memref<8x8x32xf32, #tpu.memory_space<vmem>>, %arg7: memref<8x8x32xf32, #tpu.memory_space<vmem>>, %arg8: memref<2x8x32xf32, #tpu.memory_space<vmem>>) attributes {dimension_semantics = [#tpu.dimension_semantics<arbitrary>], iteration_bounds = array<i64: 1>, scalar_prefetch = 0 : i64, scratch_operands = 1 : i64, tpu.core_type = #tpu.core_type<tc>, window_params = [{pipeline_mode = #tpu.pipeline_mode<synchronous>, transform_indices = @transform_0, window_bounds = array<i64: 8, 1>}, {pipeline_mode = #tpu.pipeline_mode<synchronous>, transform_indices = @transform_1, window_bounds = array<i64: 2, 32, 128>}, {pipeline_mode = #tpu.pipeline_mode<synchronous>, transform_indices = @transform_2, window_bounds = array<i64: 2, 1, 32>}, {transform_indices = @transform_3, window_bounds = array<i64: 8, 8, 128>}, {transform_indices = @transform_4, window_bounds = array<i64: 8, 8, 128>}, {transform_indices = @transform_5, window_bounds = array<i64: 8, 8, 32>}, {transform_indices = @transform_6, window_bounds = array<i64: 8, 8, 32>}]} {
    %c0_i32 = arith.constant 0 : i32
    %0 = arith.cmpi eq, %arg0, %c0_i32 : i32
    %1 = arith.extui %0 : i1 to i32
    %c0_i32_0 = arith.constant 0 : i32
    %2 = arith.cmpi ne, %1, %c0_i32_0 : i32
    scf.if %2 {
      %cst_180 = arith.constant 0.000000e+00 : f32
      %757 = vector.broadcast %cst_180 : f32 to vector<2x8x32xf32>
      %c0_181 = arith.constant 0 : index
      %c0_182 = arith.constant 0 : index
      %c0_183 = arith.constant 0 : index
      %758 = vector.load %arg8[%c0_181, %c0_182, %c0_183] : memref<2x8x32xf32, #tpu.memory_space<vmem>>, vector<2x8x32xf32>
      tpu.vector_store %arg8[%c0_181, %c0_182, %c0_183], %757 {strides = array<i32>} : memref<2x8x32xf32, #tpu.memory_space<vmem>>, vector<2x8x32xf32>,
    } else {
    }
    %c0 = arith.constant 0 : index
    %c0_1 = arith.constant 0 : index
    %3 = vector.load %arg1[%c0, %c0_1] : memref<8x1xi32, #tpu.memory_space<vmem>>, vector<8x1xi32>
    %c0_2 = arith.constant 0 : index
    %c0_3 = arith.constant 0 : index
    %c0_4 = arith.constant 0 : index
    %4 = vector.load %arg2[%c0_2, %c0_3, %c0_4] : memref<2x32x128xf32, #tpu.memory_space<vmem>>, vector<1x32x128xf32>
    %5 = vector.shape_cast %4 : vector<1x32x128xf32> to vector<32x128xf32>
    %c1 = arith.constant 1 : index
    %c0_5 = arith.constant 0 : index
    %c0_6 = arith.constant 0 : index
    %6 = vector.load %arg2[%c1, %c0_5, %c0_6] : memref<2x32x128xf32, #tpu.memory_space<vmem>>, vector<1x32x128xf32>
    %7 = vector.shape_cast %6 : vector<1x32x128xf32> to vector<32x128xf32>
    %c0_7 = arith.constant 0 : index
    %c0_8 = arith.constant 0 : index
    %c0_9 = arith.constant 0 : index
    %8 = vector.load %arg3[%c0_7, %c0_8, %c0_9] : memref<2x1x32xf32, #tpu.memory_space<vmem>>, vector<1x1x32xf32>
    %9 = vector.shape_cast %8 : vector<1x1x32xf32> to vector<1x32xf32>
    %10 = vector.shape_cast %9 : vector<1x32xf32> to vector<1x32xf32>
    %11 = vector.broadcast %10 : vector<1x32xf32> to vector<8x32xf32>
    %c1_10 = arith.constant 1 : index
    %c0_11 = arith.constant 0 : index
    %c0_12 = arith.constant 0 : index
    %12 = vector.load %arg3[%c1_10, %c0_11, %c0_12] : memref<2x1x32xf32, #tpu.memory_space<vmem>>, vector<1x1x32xf32>
    %13 = vector.shape_cast %12 : vector<1x1x32xf32> to vector<1x32xf32>
    %14 = vector.shape_cast %13 : vector<1x32xf32> to vector<1x32xf32>
    %15 = vector.broadcast %14 : vector<1x32xf32> to vector<8x32xf32>
    %c0_13 = arith.constant 0 : index
    %c0_14 = arith.constant 0 : index
    %c0_15 = arith.constant 0 : index
    %16 = vector.load %arg8[%c0_13, %c0_14, %c0_15] : memref<2x8x32xf32, #tpu.memory_space<vmem>>, vector<1x8x32xf32>
    %17 = vector.shape_cast %16 : vector<1x8x32xf32> to vector<8x32xf32>
    %c1_16 = arith.constant 1 : index
    %c0_17 = arith.constant 0 : index
    %c0_18 = arith.constant 0 : index
    %18 = vector.load %arg8[%c1_16, %c0_17, %c0_18] : memref<2x8x32xf32, #tpu.memory_space<vmem>>, vector<1x8x32xf32>
    %19 = vector.shape_cast %18 : vector<1x8x32xf32> to vector<8x32xf32>
    %c8_i32 = arith.constant 8 : i32
    %20 = arith.muli %arg0, %c8_i32 : i32
    %c0_i32_19 = arith.constant 0 : i32
    %21 = arith.subi %c0_i32_19, %arg0 : i32
    %c8_i32_20 = arith.constant 8 : i32
    %22 = arith.muli %21, %c8_i32_20 : i32
    %c0_i32_21 = arith.constant 0 : i32
    %23 = arith.index_cast %c0_i32_21 : i32 to index
    %c0_22 = arith.constant 0 : index
    %c0_23 = arith.constant 0 : index
    %24 = vector.load %arg4[%23, %c0_22, %c0_23] : memref<8x8x128xf32, #tpu.memory_space<vmem>>, vector<1x8x128xf32>
    %25 = vector.shape_cast %24 : vector<1x8x128xf32> to vector<8x128xf32>
    %26 = arith.addi %20, %c0_i32_21 : i32
    %cst = arith.constant dense<0.000000e+00> : vector<8x128xf32>
    %27 = tpu.matmul %17, %5, %cst {dimension_numbers = #tpu.dot_dimension_numbers<[1], [0], [0], [1], [0, 0, 1, 1], [], []>} : vector<8x32xf32>, vector<32x128xf32>, vector<8x128xf32> -> vector<8x128xf32>
    %28 = vector.extract_strided_slice %25 {offsets = [0, 0], sizes = [8, 32], strides = [1, 1]} : vector<8x128xf32> to vector<8x32xf32>
    %29 = vector.extract_strided_slice %27 {offsets = [0, 0], sizes = [8, 32], strides = [1, 1]} : vector<8x128xf32> to vector<8x32xf32>
    %30 = arith.addf %28, %29 : vector<8x32xf32>
    %31 = arith.negf %30 : vector<8x32xf32>
    %32 = math.exp %31 : vector<8x32xf32>
    %cst_24 = arith.constant 1.000000e+00 : f32
    %33 = vector.broadcast %cst_24 : f32 to vector<8x32xf32>
    %34 = arith.addf %33, %32 : vector<8x32xf32>
    %35 = arith.divf %33, %34 : vector<8x32xf32>
    %36 = vector.extract_strided_slice %25 {offsets = [0, 32], sizes = [8, 32], strides = [1, 1]} : vector<8x128xf32> to vector<8x32xf32>
    %37 = vector.extract_strided_slice %27 {offsets = [0, 32], sizes = [8, 32], strides = [1, 1]} : vector<8x128xf32> to vector<8x32xf32>
    %38 = arith.addf %36, %37 : vector<8x32xf32>
    %39 = arith.negf %38 : vector<8x32xf32>
    %40 = math.exp %39 : vector<8x32xf32>
    %cst_25 = arith.constant 1.000000e+00 : f32
    %41 = vector.broadcast %cst_25 : f32 to vector<8x32xf32>
    %42 = arith.addf %41, %40 : vector<8x32xf32>
    %43 = arith.divf %41, %42 : vector<8x32xf32>
    %44 = vector.extract_strided_slice %25 {offsets = [0, 64], sizes = [8, 32], strides = [1, 1]} : vector<8x128xf32> to vector<8x32xf32>
    %45 = vector.extract_strided_slice %27 {offsets = [0, 64], sizes = [8, 32], strides = [1, 1]} : vector<8x128xf32> to vector<8x32xf32>
    %46 = arith.addf %45, %11 : vector<8x32xf32>
    %47 = arith.mulf %35, %46 : vector<8x32xf32>
    %48 = arith.addf %44, %47 : vector<8x32xf32>
    %49 = math.tanh %48 : vector<8x32xf32>
    %cst_26 = arith.constant 1.000000e+00 : f32
    %50 = vector.broadcast %cst_26 : f32 to vector<8x32xf32>
    %51 = arith.subf %50, %43 : vector<8x32xf32>
    %52 = arith.mulf %51, %49 : vector<8x32xf32>
    %53 = arith.mulf %43, %17 : vector<8x32xf32>
    %54 = arith.addf %52, %53 : vector<8x32xf32>
    %55 = vector.broadcast %26 : i32 to vector<8x1xi32>
    %56 = arith.cmpi slt, %55, %3 : vector<8x1xi32>
    %57 = vector.shape_cast %56 : vector<8x1xi1> to vector<8x1xi1>
    %58 = vector.broadcast %57 : vector<8x1xi1> to vector<8x32xi1>
    %59 = arith.select %58, %54, %17 : vector<8x32xi1>, vector<8x32xf32>
    %cst_27 = arith.constant 0.000000e+00 : f32
    %60 = vector.shape_cast %56 : vector<8x1xi1> to vector<8x1xi1>
    %61 = vector.broadcast %60 : vector<8x1xi1> to vector<8x32xi1>
    %62 = vector.broadcast %cst_27 : f32 to vector<8x32xf32>
    %63 = arith.select %61, %54, %62 : vector<8x32xi1>, vector<8x32xf32>
    %64 = arith.index_cast %c0_i32_21 : i32 to index
    %c0_28 = arith.constant 0 : index
    %c0_29 = arith.constant 0 : index
    %65 = vector.load %arg6[%64, %c0_28, %c0_29] : memref<8x8x32xf32, #tpu.memory_space<vmem>>, vector<1x8x32xf32>
    %66 = vector.shape_cast %65 : vector<1x8x32xf32> to vector<8x32xf32>
    %67 = vector.shape_cast %63 : vector<8x32xf32> to vector<1x8x32xf32>
    tpu.vector_store %arg6[%64, %c0_28, %c0_29], %67 {strides = array<i32>} : memref<8x8x32xf32, #tpu.memory_space<vmem>>, vector<1x8x32xf32>,
    %c7_i32 = arith.constant 7 : i32
    %68 = arith.subi %c7_i32, %c0_i32_21 : i32
    %69 = arith.index_cast %68 : i32 to index
    %c0_30 = arith.constant 0 : index
    %c0_31 = arith.constant 0 : index
    %70 = vector.load %arg5[%69, %c0_30, %c0_31] : memref<8x8x128xf32, #tpu.memory_space<vmem>>, vector<1x8x128xf32>
    %71 = vector.shape_cast %70 : vector<1x8x128xf32> to vector<8x128xf32>
    %72 = arith.addi %22, %68 : i32
    %cst_32 = arith.constant dense<0.000000e+00> : vector<8x128xf32>
    %73 = tpu.matmul %19, %7, %cst_32 {dimension_numbers = #tpu.dot_dimension_numbers<[1], [0], [0], [1], [0, 0, 1, 1], [], []>} : vector<8x32xf32>, vector<32x128xf32>, vector<8x128xf32> -> vector<8x128xf32>
    %74 = vector.extract_strided_slice %71 {offsets = [0, 0], sizes = [8, 32], strides = [1, 1]} : vector<8x128xf32> to vector<8x32xf32>
    %75 = vector.extract_strided_slice %73 {offsets = [0, 0], sizes = [8, 32], strides = [1, 1]} : vector<8x128xf32> to vector<8x32xf32>
    %76 = arith.addf %74, %75 : vector<8x32xf32>
    %77 = arith.negf %76 : vector<8x32xf32>
    %78 = math.exp %77 : vector<8x32xf32>
    %cst_33 = arith.constant 1.000000e+00 : f32
    %79 = vector.broadcast %cst_33 : f32 to vector<8x32xf32>
    %80 = arith.addf %79, %78 : vector<8x32xf32>
    %81 = arith.divf %79, %80 : vector<8x32xf32>
    %82 = vector.extract_strided_slice %71 {offsets = [0, 32], sizes = [8, 32], strides = [1, 1]} : vector<8x128xf32> to vector<8x32xf32>
    %83 = vector.extract_strided_slice %73 {offsets = [0, 32], sizes = [8, 32], strides = [1, 1]} : vector<8x128xf32> to vector<8x32xf32>
    %84 = arith.addf %82, %83 : vector<8x32xf32>
    %85 = arith.negf %84 : vector<8x32xf32>
    %86 = math.exp %85 : vector<8x32xf32>
    %cst_34 = arith.constant 1.000000e+00 : f32
    %87 = vector.broadcast %cst_34 : f32 to vector<8x32xf32>
    %88 = arith.addf %87, %86 : vector<8x32xf32>
    %89 = arith.divf %87, %88 : vector<8x32xf32>
    %90 = vector.extract_strided_slice %71 {offsets = [0, 64], sizes = [8, 32], strides = [1, 1]} : vector<8x128xf32> to vector<8x32xf32>
    %91 = vector.extract_strided_slice %73 {offsets = [0, 64], sizes = [8, 32], strides = [1, 1]} : vector<8x128xf32> to vector<8x32xf32>
    %92 = arith.addf %91, %15 : vector<8x32xf32>
    %93 = arith.mulf %81, %92 : vector<8x32xf32>
    %94 = arith.addf %90, %93 : vector<8x32xf32>
    %95 = math.tanh %94 : vector<8x32xf32>
    %cst_35 = arith.constant 1.000000e+00 : f32
    %96 = vector.broadcast %cst_35 : f32 to vector<8x32xf32>
    %97 = arith.subf %96, %89 : vector<8x32xf32>
    %98 = arith.mulf %97, %95 : vector<8x32xf32>
    %99 = arith.mulf %89, %19 : vector<8x32xf32>
    %100 = arith.addf %98, %99 : vector<8x32xf32>
    %101 = vector.broadcast %72 : i32 to vector<8x1xi32>
    %102 = arith.cmpi slt, %101, %3 : vector<8x1xi32>
    %103 = vector.shape_cast %102 : vector<8x1xi1> to vector<8x1xi1>
    %104 = vector.broadcast %103 : vector<8x1xi1> to vector<8x32xi1>
    %105 = arith.select %104, %100, %19 : vector<8x32xi1>, vector<8x32xf32>
    %cst_36 = arith.constant 0.000000e+00 : f32
    %106 = vector.shape_cast %102 : vector<8x1xi1> to vector<8x1xi1>
    %107 = vector.broadcast %106 : vector<8x1xi1> to vector<8x32xi1>
    %108 = vector.broadcast %cst_36 : f32 to vector<8x32xf32>
    %109 = arith.select %107, %100, %108 : vector<8x32xi1>, vector<8x32xf32>
    %110 = arith.index_cast %68 : i32 to index
    %c0_37 = arith.constant 0 : index
    %c0_38 = arith.constant 0 : index
    %111 = vector.load %arg7[%110, %c0_37, %c0_38] : memref<8x8x32xf32, #tpu.memory_space<vmem>>, vector<1x8x32xf32>
    %112 = vector.shape_cast %111 : vector<1x8x32xf32> to vector<8x32xf32>
    %113 = vector.shape_cast %109 : vector<8x32xf32> to vector<1x8x32xf32>
    tpu.vector_store %arg7[%110, %c0_37, %c0_38], %113 {strides = array<i32>} : memref<8x8x32xf32, #tpu.memory_space<vmem>>, vector<1x8x32xf32>,
    %c1_i32 = arith.constant 1 : i32
    %114 = arith.index_cast %c1_i32 : i32 to index
    %c0_39 = arith.constant 0 : index
    %c0_40 = arith.constant 0 : index
    %115 = vector.load %arg4[%114, %c0_39, %c0_40] : memref<8x8x128xf32, #tpu.memory_space<vmem>>, vector<1x8x128xf32>
    %116 = vector.shape_cast %115 : vector<1x8x128xf32> to vector<8x128xf32>
    %117 = arith.addi %20, %c1_i32 : i32
    %cst_41 = arith.constant dense<0.000000e+00> : vector<8x128xf32>
    %118 = tpu.matmul %59, %5, %cst_41 {dimension_numbers = #tpu.dot_dimension_numbers<[1], [0], [0], [1], [0, 0, 1, 1], [], []>} : vector<8x32xf32>, vector<32x128xf32>, vector<8x128xf32> -> vector<8x128xf32>
    %119 = vector.extract_strided_slice %116 {offsets = [0, 0], sizes = [8, 32], strides = [1, 1]} : vector<8x128xf32> to vector<8x32xf32>
    %120 = vector.extract_strided_slice %118 {offsets = [0, 0], sizes = [8, 32], strides = [1, 1]} : vector<8x128xf32> to vector<8x32xf32>
    %121 = arith.addf %119, %120 : vector<8x32xf32>
    %122 = arith.negf %121 : vector<8x32xf32>
    %123 = math.exp %122 : vector<8x32xf32>
    %cst_42 = arith.constant 1.000000e+00 : f32
    %124 = vector.broadcast %cst_42 : f32 to vector<8x32xf32>
    %125 = arith.addf %124, %123 : vector<8x32xf32>
    %126 = arith.divf %124, %125 : vector<8x32xf32>
    %127 = vector.extract_strided_slice %116 {offsets = [0, 32], sizes = [8, 32], strides = [1, 1]} : vector<8x128xf32> to vector<8x32xf32>
    %128 = vector.extract_strided_slice %118 {offsets = [0, 32], sizes = [8, 32], strides = [1, 1]} : vector<8x128xf32> to vector<8x32xf32>
    %129 = arith.addf %127, %128 : vector<8x32xf32>
    %130 = arith.negf %129 : vector<8x32xf32>
    %131 = math.exp %130 : vector<8x32xf32>
    %cst_43 = arith.constant 1.000000e+00 : f32
    %132 = vector.broadcast %cst_43 : f32 to vector<8x32xf32>
    %133 = arith.addf %132, %131 : vector<8x32xf32>
    %134 = arith.divf %132, %133 : vector<8x32xf32>
    %135 = vector.extract_strided_slice %116 {offsets = [0, 64], sizes = [8, 32], strides = [1, 1]} : vector<8x128xf32> to vector<8x32xf32>
    %136 = vector.extract_strided_slice %118 {offsets = [0, 64], sizes = [8, 32], strides = [1, 1]} : vector<8x128xf32> to vector<8x32xf32>
    %137 = arith.addf %136, %11 : vector<8x32xf32>
    %138 = arith.mulf %126, %137 : vector<8x32xf32>
    %139 = arith.addf %135, %138 : vector<8x32xf32>
    %140 = math.tanh %139 : vector<8x32xf32>
    %cst_44 = arith.constant 1.000000e+00 : f32
    %141 = vector.broadcast %cst_44 : f32 to vector<8x32xf32>
    %142 = arith.subf %141, %134 : vector<8x32xf32>
    %143 = arith.mulf %142, %140 : vector<8x32xf32>
    %144 = arith.mulf %134, %59 : vector<8x32xf32>
    %145 = arith.addf %143, %144 : vector<8x32xf32>
    %146 = vector.broadcast %117 : i32 to vector<8x1xi32>
    %147 = arith.cmpi slt, %146, %3 : vector<8x1xi32>
    %148 = vector.shape_cast %147 : vector<8x1xi1> to vector<8x1xi1>
    %149 = vector.broadcast %148 : vector<8x1xi1> to vector<8x32xi1>
    %150 = arith.select %149, %145, %59 : vector<8x32xi1>, vector<8x32xf32>
    %cst_45 = arith.constant 0.000000e+00 : f32
    %151 = vector.shape_cast %147 : vector<8x1xi1> to vector<8x1xi1>
    %152 = vector.broadcast %151 : vector<8x1xi1> to vector<8x32xi1>
    %153 = vector.broadcast %cst_45 : f32 to vector<8x32xf32>
    %154 = arith.select %152, %145, %153 : vector<8x32xi1>, vector<8x32xf32>
    %155 = arith.index_cast %c1_i32 : i32 to index
    %c0_46 = arith.constant 0 : index
    %c0_47 = arith.constant 0 : index
    %156 = vector.load %arg6[%155, %c0_46, %c0_47] : memref<8x8x32xf32, #tpu.memory_space<vmem>>, vector<1x8x32xf32>
    %157 = vector.shape_cast %156 : vector<1x8x32xf32> to vector<8x32xf32>
    %158 = vector.shape_cast %154 : vector<8x32xf32> to vector<1x8x32xf32>
    tpu.vector_store %arg6[%155, %c0_46, %c0_47], %158 {strides = array<i32>} : memref<8x8x32xf32, #tpu.memory_space<vmem>>, vector<1x8x32xf32>,
    %c7_i32_48 = arith.constant 7 : i32
    %159 = arith.subi %c7_i32_48, %c1_i32 : i32
    %160 = arith.index_cast %159 : i32 to index
    %c0_49 = arith.constant 0 : index
    %c0_50 = arith.constant 0 : index
    %161 = vector.load %arg5[%160, %c0_49, %c0_50] : memref<8x8x128xf32, #tpu.memory_space<vmem>>, vector<1x8x128xf32>
    %162 = vector.shape_cast %161 : vector<1x8x128xf32> to vector<8x128xf32>
    %163 = arith.addi %22, %159 : i32
    %cst_51 = arith.constant dense<0.000000e+00> : vector<8x128xf32>
    %164 = tpu.matmul %105, %7, %cst_51 {dimension_numbers = #tpu.dot_dimension_numbers<[1], [0], [0], [1], [0, 0, 1, 1], [], []>} : vector<8x32xf32>, vector<32x128xf32>, vector<8x128xf32> -> vector<8x128xf32>
    %165 = vector.extract_strided_slice %162 {offsets = [0, 0], sizes = [8, 32], strides = [1, 1]} : vector<8x128xf32> to vector<8x32xf32>
    %166 = vector.extract_strided_slice %164 {offsets = [0, 0], sizes = [8, 32], strides = [1, 1]} : vector<8x128xf32> to vector<8x32xf32>
    %167 = arith.addf %165, %166 : vector<8x32xf32>
    %168 = arith.negf %167 : vector<8x32xf32>
    %169 = math.exp %168 : vector<8x32xf32>
    %cst_52 = arith.constant 1.000000e+00 : f32
    %170 = vector.broadcast %cst_52 : f32 to vector<8x32xf32>
    %171 = arith.addf %170, %169 : vector<8x32xf32>
    %172 = arith.divf %170, %171 : vector<8x32xf32>
    %173 = vector.extract_strided_slice %162 {offsets = [0, 32], sizes = [8, 32], strides = [1, 1]} : vector<8x128xf32> to vector<8x32xf32>
    %174 = vector.extract_strided_slice %164 {offsets = [0, 32], sizes = [8, 32], strides = [1, 1]} : vector<8x128xf32> to vector<8x32xf32>
    %175 = arith.addf %173, %174 : vector<8x32xf32>
    %176 = arith.negf %175 : vector<8x32xf32>
    %177 = math.exp %176 : vector<8x32xf32>
    %cst_53 = arith.constant 1.000000e+00 : f32
    %178 = vector.broadcast %cst_53 : f32 to vector<8x32xf32>
    %179 = arith.addf %178, %177 : vector<8x32xf32>
    %180 = arith.divf %178, %179 : vector<8x32xf32>
    %181 = vector.extract_strided_slice %162 {offsets = [0, 64], sizes = [8, 32], strides = [1, 1]} : vector<8x128xf32> to vector<8x32xf32>
    %182 = vector.extract_strided_slice %164 {offsets = [0, 64], sizes = [8, 32], strides = [1, 1]} : vector<8x128xf32> to vector<8x32xf32>
    %183 = arith.addf %182, %15 : vector<8x32xf32>
    %184 = arith.mulf %172, %183 : vector<8x32xf32>
    %185 = arith.addf %181, %184 : vector<8x32xf32>
    %186 = math.tanh %185 : vector<8x32xf32>
    %cst_54 = arith.constant 1.000000e+00 : f32
    %187 = vector.broadcast %cst_54 : f32 to vector<8x32xf32>
    %188 = arith.subf %187, %180 : vector<8x32xf32>
    %189 = arith.mulf %188, %186 : vector<8x32xf32>
    %190 = arith.mulf %180, %105 : vector<8x32xf32>
    %191 = arith.addf %189, %190 : vector<8x32xf32>
    %192 = vector.broadcast %163 : i32 to vector<8x1xi32>
    %193 = arith.cmpi slt, %192, %3 : vector<8x1xi32>
    %194 = vector.shape_cast %193 : vector<8x1xi1> to vector<8x1xi1>
    %195 = vector.broadcast %194 : vector<8x1xi1> to vector<8x32xi1>
    %196 = arith.select %195, %191, %105 : vector<8x32xi1>, vector<8x32xf32>
    %cst_55 = arith.constant 0.000000e+00 : f32
    %197 = vector.shape_cast %193 : vector<8x1xi1> to vector<8x1xi1>
    %198 = vector.broadcast %197 : vector<8x1xi1> to vector<8x32xi1>
    %199 = vector.broadcast %cst_55 : f32 to vector<8x32xf32>
    %200 = arith.select %198, %191, %199 : vector<8x32xi1>, vector<8x32xf32>
    %201 = arith.index_cast %159 : i32 to index
    %c0_56 = arith.constant 0 : index
    %c0_57 = arith.constant 0 : index
    %202 = vector.load %arg7[%201, %c0_56, %c0_57] : memref<8x8x32xf32, #tpu.memory_space<vmem>>, vector<1x8x32xf32>
    %203 = vector.shape_cast %202 : vector<1x8x32xf32> to vector<8x32xf32>
    %204 = vector.shape_cast %200 : vector<8x32xf32> to vector<1x8x32xf32>
    tpu.vector_store %arg7[%201, %c0_56, %c0_57], %204 {strides = array<i32>} : memref<8x8x32xf32, #tpu.memory_space<vmem>>, vector<1x8x32xf32>,
    %c2_i32 = arith.constant 2 : i32
    %205 = arith.index_cast %c2_i32 : i32 to index
    %c0_58 = arith.constant 0 : index
    %c0_59 = arith.constant 0 : index
    %206 = vector.load %arg4[%205, %c0_58, %c0_59] : memref<8x8x128xf32, #tpu.memory_space<vmem>>, vector<1x8x128xf32>
    %207 = vector.shape_cast %206 : vector<1x8x128xf32> to vector<8x128xf32>
    %208 = arith.addi %20, %c2_i32 : i32
    %cst_60 = arith.constant dense<0.000000e+00> : vector<8x128xf32>
    %209 = tpu.matmul %150, %5, %cst_60 {dimension_numbers = #tpu.dot_dimension_numbers<[1], [0], [0], [1], [0, 0, 1, 1], [], []>} : vector<8x32xf32>, vector<32x128xf32>, vector<8x128xf32> -> vector<8x128xf32>
    %210 = vector.extract_strided_slice %207 {offsets = [0, 0], sizes = [8, 32], strides = [1, 1]} : vector<8x128xf32> to vector<8x32xf32>
    %211 = vector.extract_strided_slice %209 {offsets = [0, 0], sizes = [8, 32], strides = [1, 1]} : vector<8x128xf32> to vector<8x32xf32>
    %212 = arith.addf %210, %211 : vector<8x32xf32>
    %213 = arith.negf %212 : vector<8x32xf32>
    %214 = math.exp %213 : vector<8x32xf32>
    %cst_61 = arith.constant 1.000000e+00 : f32
    %215 = vector.broadcast %cst_61 : f32 to vector<8x32xf32>
    %216 = arith.addf %215, %214 : vector<8x32xf32>
    %217 = arith.divf %215, %216 : vector<8x32xf32>
    %218 = vector.extract_strided_slice %207 {offsets = [0, 32], sizes = [8, 32], strides = [1, 1]} : vector<8x128xf32> to vector<8x32xf32>
    %219 = vector.extract_strided_slice %209 {offsets = [0, 32], sizes = [8, 32], strides = [1, 1]} : vector<8x128xf32> to vector<8x32xf32>
    %220 = arith.addf %218, %219 : vector<8x32xf32>
    %221 = arith.negf %220 : vector<8x32xf32>
    %222 = math.exp %221 : vector<8x32xf32>
    %cst_62 = arith.constant 1.000000e+00 : f32
    %223 = vector.broadcast %cst_62 : f32 to vector<8x32xf32>
    %224 = arith.addf %223, %222 : vector<8x32xf32>
    %225 = arith.divf %223, %224 : vector<8x32xf32>
    %226 = vector.extract_strided_slice %207 {offsets = [0, 64], sizes = [8, 32], strides = [1, 1]} : vector<8x128xf32> to vector<8x32xf32>
    %227 = vector.extract_strided_slice %209 {offsets = [0, 64], sizes = [8, 32], strides = [1, 1]} : vector<8x128xf32> to vector<8x32xf32>
    %228 = arith.addf %227, %11 : vector<8x32xf32>
    %229 = arith.mulf %217, %228 : vector<8x32xf32>
    %230 = arith.addf %226, %229 : vector<8x32xf32>
    %231 = math.tanh %230 : vector<8x32xf32>
    %cst_63 = arith.constant 1.000000e+00 : f32
    %232 = vector.broadcast %cst_63 : f32 to vector<8x32xf32>
    %233 = arith.subf %232, %225 : vector<8x32xf32>
    %234 = arith.mulf %233, %231 : vector<8x32xf32>
    %235 = arith.mulf %225, %150 : vector<8x32xf32>
    %236 = arith.addf %234, %235 : vector<8x32xf32>
    %237 = vector.broadcast %208 : i32 to vector<8x1xi32>
    %238 = arith.cmpi slt, %237, %3 : vector<8x1xi32>
    %239 = vector.shape_cast %238 : vector<8x1xi1> to vector<8x1xi1>
    %240 = vector.broadcast %239 : vector<8x1xi1> to vector<8x32xi1>
    %241 = arith.select %240, %236, %150 : vector<8x32xi1>, vector<8x32xf32>
    %cst_64 = arith.constant 0.000000e+00 : f32
    %242 = vector.shape_cast %238 : vector<8x1xi1> to vector<8x1xi1>
    %243 = vector.broadcast %242 : vector<8x1xi1> to vector<8x32xi1>
    %244 = vector.broadcast %cst_64 : f32 to vector<8x32xf32>
    %245 = arith.select %243, %236, %244 : vector<8x32xi1>, vector<8x32xf32>
    %246 = arith.index_cast %c2_i32 : i32 to index
    %c0_65 = arith.constant 0 : index
    %c0_66 = arith.constant 0 : index
    %247 = vector.load %arg6[%246, %c0_65, %c0_66] : memref<8x8x32xf32, #tpu.memory_space<vmem>>, vector<1x8x32xf32>
    %248 = vector.shape_cast %247 : vector<1x8x32xf32> to vector<8x32xf32>
    %249 = vector.shape_cast %245 : vector<8x32xf32> to vector<1x8x32xf32>
    tpu.vector_store %arg6[%246, %c0_65, %c0_66], %249 {strides = array<i32>} : memref<8x8x32xf32, #tpu.memory_space<vmem>>, vector<1x8x32xf32>,
    %c7_i32_67 = arith.constant 7 : i32
    %250 = arith.subi %c7_i32_67, %c2_i32 : i32
    %251 = arith.index_cast %250 : i32 to index
    %c0_68 = arith.constant 0 : index
    %c0_69 = arith.constant 0 : index
    %252 = vector.load %arg5[%251, %c0_68, %c0_69] : memref<8x8x128xf32, #tpu.memory_space<vmem>>, vector<1x8x128xf32>
    %253 = vector.shape_cast %252 : vector<1x8x128xf32> to vector<8x128xf32>
    %254 = arith.addi %22, %250 : i32
    %cst_70 = arith.constant dense<0.000000e+00> : vector<8x128xf32>
    %255 = tpu.matmul %196, %7, %cst_70 {dimension_numbers = #tpu.dot_dimension_numbers<[1], [0], [0], [1], [0, 0, 1, 1], [], []>} : vector<8x32xf32>, vector<32x128xf32>, vector<8x128xf32> -> vector<8x128xf32>
    %256 = vector.extract_strided_slice %253 {offsets = [0, 0], sizes = [8, 32], strides = [1, 1]} : vector<8x128xf32> to vector<8x32xf32>
    %257 = vector.extract_strided_slice %255 {offsets = [0, 0], sizes = [8, 32], strides = [1, 1]} : vector<8x128xf32> to vector<8x32xf32>
    %258 = arith.addf %256, %257 : vector<8x32xf32>
    %259 = arith.negf %258 : vector<8x32xf32>
    %260 = math.exp %259 : vector<8x32xf32>
    %cst_71 = arith.constant 1.000000e+00 : f32
    %261 = vector.broadcast %cst_71 : f32 to vector<8x32xf32>
    %262 = arith.addf %261, %260 : vector<8x32xf32>
    %263 = arith.divf %261, %262 : vector<8x32xf32>
    %264 = vector.extract_strided_slice %253 {offsets = [0, 32], sizes = [8, 32], strides = [1, 1]} : vector<8x128xf32> to vector<8x32xf32>
    %265 = vector.extract_strided_slice %255 {offsets = [0, 32], sizes = [8, 32], strides = [1, 1]} : vector<8x128xf32> to vector<8x32xf32>
    %266 = arith.addf %264, %265 : vector<8x32xf32>
    %267 = arith.negf %266 : vector<8x32xf32>
    %268 = math.exp %267 : vector<8x32xf32>
    %cst_72 = arith.constant 1.000000e+00 : f32
    %269 = vector.broadcast %cst_72 : f32 to vector<8x32xf32>
    %270 = arith.addf %269, %268 : vector<8x32xf32>
    %271 = arith.divf %269, %270 : vector<8x32xf32>
    %272 = vector.extract_strided_slice %253 {offsets = [0, 64], sizes = [8, 32], strides = [1, 1]} : vector<8x128xf32> to vector<8x32xf32>
    %273 = vector.extract_strided_slice %255 {offsets = [0, 64], sizes = [8, 32], strides = [1, 1]} : vector<8x128xf32> to vector<8x32xf32>
    %274 = arith.addf %273, %15 : vector<8x32xf32>
    %275 = arith.mulf %263, %274 : vector<8x32xf32>
    %276 = arith.addf %272, %275 : vector<8x32xf32>
    %277 = math.tanh %276 : vector<8x32xf32>
    %cst_73 = arith.constant 1.000000e+00 : f32
    %278 = vector.broadcast %cst_73 : f32 to vector<8x32xf32>
    %279 = arith.subf %278, %271 : vector<8x32xf32>
    %280 = arith.mulf %279, %277 : vector<8x32xf32>
    %281 = arith.mulf %271, %196 : vector<8x32xf32>
    %282 = arith.addf %280, %281 : vector<8x32xf32>
    %283 = vector.broadcast %254 : i32 to vector<8x1xi32>
    %284 = arith.cmpi slt, %283, %3 : vector<8x1xi32>
    %285 = vector.shape_cast %284 : vector<8x1xi1> to vector<8x1xi1>
    %286 = vector.broadcast %285 : vector<8x1xi1> to vector<8x32xi1>
    %287 = arith.select %286, %282, %196 : vector<8x32xi1>, vector<8x32xf32>
    %cst_74 = arith.constant 0.000000e+00 : f32
    %288 = vector.shape_cast %284 : vector<8x1xi1> to vector<8x1xi1>
    %289 = vector.broadcast %288 : vector<8x1xi1> to vector<8x32xi1>
    %290 = vector.broadcast %cst_74 : f32 to vector<8x32xf32>
    %291 = arith.select %289, %282, %290 : vector<8x32xi1>, vector<8x32xf32>
    %292 = arith.index_cast %250 : i32 to index
    %c0_75 = arith.constant 0 : index
    %c0_76 = arith.constant 0 : index
    %293 = vector.load %arg7[%292, %c0_75, %c0_76] : memref<8x8x32xf32, #tpu.memory_space<vmem>>, vector<1x8x32xf32>
    %294 = vector.shape_cast %293 : vector<1x8x32xf32> to vector<8x32xf32>
    %295 = vector.shape_cast %291 : vector<8x32xf32> to vector<1x8x32xf32>
    tpu.vector_store %arg7[%292, %c0_75, %c0_76], %295 {strides = array<i32>} : memref<8x8x32xf32, #tpu.memory_space<vmem>>, vector<1x8x32xf32>,
    %c3_i32 = arith.constant 3 : i32
    %296 = arith.index_cast %c3_i32 : i32 to index
    %c0_77 = arith.constant 0 : index
    %c0_78 = arith.constant 0 : index
    %297 = vector.load %arg4[%296, %c0_77, %c0_78] : memref<8x8x128xf32, #tpu.memory_space<vmem>>, vector<1x8x128xf32>
    %298 = vector.shape_cast %297 : vector<1x8x128xf32> to vector<8x128xf32>
    %299 = arith.addi %20, %c3_i32 : i32
    %cst_79 = arith.constant dense<0.000000e+00> : vector<8x128xf32>
    %300 = tpu.matmul %241, %5, %cst_79 {dimension_numbers = #tpu.dot_dimension_numbers<[1], [0], [0], [1], [0, 0, 1, 1], [], []>} : vector<8x32xf32>, vector<32x128xf32>, vector<8x128xf32> -> vector<8x128xf32>
    %301 = vector.extract_strided_slice %298 {offsets = [0, 0], sizes = [8, 32], strides = [1, 1]} : vector<8x128xf32> to vector<8x32xf32>
    %302 = vector.extract_strided_slice %300 {offsets = [0, 0], sizes = [8, 32], strides = [1, 1]} : vector<8x128xf32> to vector<8x32xf32>
    %303 = arith.addf %301, %302 : vector<8x32xf32>
    %304 = arith.negf %303 : vector<8x32xf32>
    %305 = math.exp %304 : vector<8x32xf32>
    %cst_80 = arith.constant 1.000000e+00 : f32
    %306 = vector.broadcast %cst_80 : f32 to vector<8x32xf32>
    %307 = arith.addf %306, %305 : vector<8x32xf32>
    %308 = arith.divf %306, %307 : vector<8x32xf32>
    %309 = vector.extract_strided_slice %298 {offsets = [0, 32], sizes = [8, 32], strides = [1, 1]} : vector<8x128xf32> to vector<8x32xf32>
    %310 = vector.extract_strided_slice %300 {offsets = [0, 32], sizes = [8, 32], strides = [1, 1]} : vector<8x128xf32> to vector<8x32xf32>
    %311 = arith.addf %309, %310 : vector<8x32xf32>
    %312 = arith.negf %311 : vector<8x32xf32>
    %313 = math.exp %312 : vector<8x32xf32>
    %cst_81 = arith.constant 1.000000e+00 : f32
    %314 = vector.broadcast %cst_81 : f32 to vector<8x32xf32>
    %315 = arith.addf %314, %313 : vector<8x32xf32>
    %316 = arith.divf %314, %315 : vector<8x32xf32>
    %317 = vector.extract_strided_slice %298 {offsets = [0, 64], sizes = [8, 32], strides = [1, 1]} : vector<8x128xf32> to vector<8x32xf32>
    %318 = vector.extract_strided_slice %300 {offsets = [0, 64], sizes = [8, 32], strides = [1, 1]} : vector<8x128xf32> to vector<8x32xf32>
    %319 = arith.addf %318, %11 : vector<8x32xf32>
    %320 = arith.mulf %308, %319 : vector<8x32xf32>
    %321 = arith.addf %317, %320 : vector<8x32xf32>
    %322 = math.tanh %321 : vector<8x32xf32>
    %cst_82 = arith.constant 1.000000e+00 : f32
    %323 = vector.broadcast %cst_82 : f32 to vector<8x32xf32>
    %324 = arith.subf %323, %316 : vector<8x32xf32>
    %325 = arith.mulf %324, %322 : vector<8x32xf32>
    %326 = arith.mulf %316, %241 : vector<8x32xf32>
    %327 = arith.addf %325, %326 : vector<8x32xf32>
    %328 = vector.broadcast %299 : i32 to vector<8x1xi32>
    %329 = arith.cmpi slt, %328, %3 : vector<8x1xi32>
    %330 = vector.shape_cast %329 : vector<8x1xi1> to vector<8x1xi1>
    %331 = vector.broadcast %330 : vector<8x1xi1> to vector<8x32xi1>
    %332 = arith.select %331, %327, %241 : vector<8x32xi1>, vector<8x32xf32>
    %cst_83 = arith.constant 0.000000e+00 : f32
    %333 = vector.shape_cast %329 : vector<8x1xi1> to vector<8x1xi1>
    %334 = vector.broadcast %333 : vector<8x1xi1> to vector<8x32xi1>
    %335 = vector.broadcast %cst_83 : f32 to vector<8x32xf32>
    %336 = arith.select %334, %327, %335 : vector<8x32xi1>, vector<8x32xf32>
    %337 = arith.index_cast %c3_i32 : i32 to index
    %c0_84 = arith.constant 0 : index
    %c0_85 = arith.constant 0 : index
    %338 = vector.load %arg6[%337, %c0_84, %c0_85] : memref<8x8x32xf32, #tpu.memory_space<vmem>>, vector<1x8x32xf32>
    %339 = vector.shape_cast %338 : vector<1x8x32xf32> to vector<8x32xf32>
    %340 = vector.shape_cast %336 : vector<8x32xf32> to vector<1x8x32xf32>
    tpu.vector_store %arg6[%337, %c0_84, %c0_85], %340 {strides = array<i32>} : memref<8x8x32xf32, #tpu.memory_space<vmem>>, vector<1x8x32xf32>,
    %c7_i32_86 = arith.constant 7 : i32
    %341 = arith.subi %c7_i32_86, %c3_i32 : i32
    %342 = arith.index_cast %341 : i32 to index
    %c0_87 = arith.constant 0 : index
    %c0_88 = arith.constant 0 : index
    %343 = vector.load %arg5[%342, %c0_87, %c0_88] : memref<8x8x128xf32, #tpu.memory_space<vmem>>, vector<1x8x128xf32>
    %344 = vector.shape_cast %343 : vector<1x8x128xf32> to vector<8x128xf32>
    %345 = arith.addi %22, %341 : i32
    %cst_89 = arith.constant dense<0.000000e+00> : vector<8x128xf32>
    %346 = tpu.matmul %287, %7, %cst_89 {dimension_numbers = #tpu.dot_dimension_numbers<[1], [0], [0], [1], [0, 0, 1, 1], [], []>} : vector<8x32xf32>, vector<32x128xf32>, vector<8x128xf32> -> vector<8x128xf32>
    %347 = vector.extract_strided_slice %344 {offsets = [0, 0], sizes = [8, 32], strides = [1, 1]} : vector<8x128xf32> to vector<8x32xf32>
    %348 = vector.extract_strided_slice %346 {offsets = [0, 0], sizes = [8, 32], strides = [1, 1]} : vector<8x128xf32> to vector<8x32xf32>
    %349 = arith.addf %347, %348 : vector<8x32xf32>
    %350 = arith.negf %349 : vector<8x32xf32>
    %351 = math.exp %350 : vector<8x32xf32>
    %cst_90 = arith.constant 1.000000e+00 : f32
    %352 = vector.broadcast %cst_90 : f32 to vector<8x32xf32>
    %353 = arith.addf %352, %351 : vector<8x32xf32>
    %354 = arith.divf %352, %353 : vector<8x32xf32>
    %355 = vector.extract_strided_slice %344 {offsets = [0, 32], sizes = [8, 32], strides = [1, 1]} : vector<8x128xf32> to vector<8x32xf32>
    %356 = vector.extract_strided_slice %346 {offsets = [0, 32], sizes = [8, 32], strides = [1, 1]} : vector<8x128xf32> to vector<8x32xf32>
    %357 = arith.addf %355, %356 : vector<8x32xf32>
    %358 = arith.negf %357 : vector<8x32xf32>
    %359 = math.exp %358 : vector<8x32xf32>
    %cst_91 = arith.constant 1.000000e+00 : f32
    %360 = vector.broadcast %cst_91 : f32 to vector<8x32xf32>
    %361 = arith.addf %360, %359 : vector<8x32xf32>
    %362 = arith.divf %360, %361 : vector<8x32xf32>
    %363 = vector.extract_strided_slice %344 {offsets = [0, 64], sizes = [8, 32], strides = [1, 1]} : vector<8x128xf32> to vector<8x32xf32>
    %364 = vector.extract_strided_slice %346 {offsets = [0, 64], sizes = [8, 32], strides = [1, 1]} : vector<8x128xf32> to vector<8x32xf32>
    %365 = arith.addf %364, %15 : vector<8x32xf32>
    %366 = arith.mulf %354, %365 : vector<8x32xf32>
    %367 = arith.addf %363, %366 : vector<8x32xf32>
    %368 = math.tanh %367 : vector<8x32xf32>
    %cst_92 = arith.constant 1.000000e+00 : f32
    %369 = vector.broadcast %cst_92 : f32 to vector<8x32xf32>
    %370 = arith.subf %369, %362 : vector<8x32xf32>
    %371 = arith.mulf %370, %368 : vector<8x32xf32>
    %372 = arith.mulf %362, %287 : vector<8x32xf32>
    %373 = arith.addf %371, %372 : vector<8x32xf32>
    %374 = vector.broadcast %345 : i32 to vector<8x1xi32>
    %375 = arith.cmpi slt, %374, %3 : vector<8x1xi32>
    %376 = vector.shape_cast %375 : vector<8x1xi1> to vector<8x1xi1>
    %377 = vector.broadcast %376 : vector<8x1xi1> to vector<8x32xi1>
    %378 = arith.select %377, %373, %287 : vector<8x32xi1>, vector<8x32xf32>
    %cst_93 = arith.constant 0.000000e+00 : f32
    %379 = vector.shape_cast %375 : vector<8x1xi1> to vector<8x1xi1>
    %380 = vector.broadcast %379 : vector<8x1xi1> to vector<8x32xi1>
    %381 = vector.broadcast %cst_93 : f32 to vector<8x32xf32>
    %382 = arith.select %380, %373, %381 : vector<8x32xi1>, vector<8x32xf32>
    %383 = arith.index_cast %341 : i32 to index
    %c0_94 = arith.constant 0 : index
    %c0_95 = arith.constant 0 : index
    %384 = vector.load %arg7[%383, %c0_94, %c0_95] : memref<8x8x32xf32, #tpu.memory_space<vmem>>, vector<1x8x32xf32>
    %385 = vector.shape_cast %384 : vector<1x8x32xf32> to vector<8x32xf32>
    %386 = vector.shape_cast %382 : vector<8x32xf32> to vector<1x8x32xf32>
    tpu.vector_store %arg7[%383, %c0_94, %c0_95], %386 {strides = array<i32>} : memref<8x8x32xf32, #tpu.memory_space<vmem>>, vector<1x8x32xf32>,
    %c4_i32 = arith.constant 4 : i32
    %387 = arith.index_cast %c4_i32 : i32 to index
    %c0_96 = arith.constant 0 : index
    %c0_97 = arith.constant 0 : index
    %388 = vector.load %arg4[%387, %c0_96, %c0_97] : memref<8x8x128xf32, #tpu.memory_space<vmem>>, vector<1x8x128xf32>
    %389 = vector.shape_cast %388 : vector<1x8x128xf32> to vector<8x128xf32>
    %390 = arith.addi %20, %c4_i32 : i32
    %cst_98 = arith.constant dense<0.000000e+00> : vector<8x128xf32>
    %391 = tpu.matmul %332, %5, %cst_98 {dimension_numbers = #tpu.dot_dimension_numbers<[1], [0], [0], [1], [0, 0, 1, 1], [], []>} : vector<8x32xf32>, vector<32x128xf32>, vector<8x128xf32> -> vector<8x128xf32>
    %392 = vector.extract_strided_slice %389 {offsets = [0, 0], sizes = [8, 32], strides = [1, 1]} : vector<8x128xf32> to vector<8x32xf32>
    %393 = vector.extract_strided_slice %391 {offsets = [0, 0], sizes = [8, 32], strides = [1, 1]} : vector<8x128xf32> to vector<8x32xf32>
    %394 = arith.addf %392, %393 : vector<8x32xf32>
    %395 = arith.negf %394 : vector<8x32xf32>
    %396 = math.exp %395 : vector<8x32xf32>
    %cst_99 = arith.constant 1.000000e+00 : f32
    %397 = vector.broadcast %cst_99 : f32 to vector<8x32xf32>
    %398 = arith.addf %397, %396 : vector<8x32xf32>
    %399 = arith.divf %397, %398 : vector<8x32xf32>
    %400 = vector.extract_strided_slice %389 {offsets = [0, 32], sizes = [8, 32], strides = [1, 1]} : vector<8x128xf32> to vector<8x32xf32>
    %401 = vector.extract_strided_slice %391 {offsets = [0, 32], sizes = [8, 32], strides = [1, 1]} : vector<8x128xf32> to vector<8x32xf32>
    %402 = arith.addf %400, %401 : vector<8x32xf32>
    %403 = arith.negf %402 : vector<8x32xf32>
    %404 = math.exp %403 : vector<8x32xf32>
    %cst_100 = arith.constant 1.000000e+00 : f32
    %405 = vector.broadcast %cst_100 : f32 to vector<8x32xf32>
    %406 = arith.addf %405, %404 : vector<8x32xf32>
    %407 = arith.divf %405, %406 : vector<8x32xf32>
    %408 = vector.extract_strided_slice %389 {offsets = [0, 64], sizes = [8, 32], strides = [1, 1]} : vector<8x128xf32> to vector<8x32xf32>
    %409 = vector.extract_strided_slice %391 {offsets = [0, 64], sizes = [8, 32], strides = [1, 1]} : vector<8x128xf32> to vector<8x32xf32>
    %410 = arith.addf %409, %11 : vector<8x32xf32>
    %411 = arith.mulf %399, %410 : vector<8x32xf32>
    %412 = arith.addf %408, %411 : vector<8x32xf32>
    %413 = math.tanh %412 : vector<8x32xf32>
    %cst_101 = arith.constant 1.000000e+00 : f32
    %414 = vector.broadcast %cst_101 : f32 to vector<8x32xf32>
    %415 = arith.subf %414, %407 : vector<8x32xf32>
    %416 = arith.mulf %415, %413 : vector<8x32xf32>
    %417 = arith.mulf %407, %332 : vector<8x32xf32>
    %418 = arith.addf %416, %417 : vector<8x32xf32>
    %419 = vector.broadcast %390 : i32 to vector<8x1xi32>
    %420 = arith.cmpi slt, %419, %3 : vector<8x1xi32>
    %421 = vector.shape_cast %420 : vector<8x1xi1> to vector<8x1xi1>
    %422 = vector.broadcast %421 : vector<8x1xi1> to vector<8x32xi1>
    %423 = arith.select %422, %418, %332 : vector<8x32xi1>, vector<8x32xf32>
    %cst_102 = arith.constant 0.000000e+00 : f32
    %424 = vector.shape_cast %420 : vector<8x1xi1> to vector<8x1xi1>
    %425 = vector.broadcast %424 : vector<8x1xi1> to vector<8x32xi1>
    %426 = vector.broadcast %cst_102 : f32 to vector<8x32xf32>
    %427 = arith.select %425, %418, %426 : vector<8x32xi1>, vector<8x32xf32>
    %428 = arith.index_cast %c4_i32 : i32 to index
    %c0_103 = arith.constant 0 : index
    %c0_104 = arith.constant 0 : index
    %429 = vector.load %arg6[%428, %c0_103, %c0_104] : memref<8x8x32xf32, #tpu.memory_space<vmem>>, vector<1x8x32xf32>
    %430 = vector.shape_cast %429 : vector<1x8x32xf32> to vector<8x32xf32>
    %431 = vector.shape_cast %427 : vector<8x32xf32> to vector<1x8x32xf32>
    tpu.vector_store %arg6[%428, %c0_103, %c0_104], %431 {strides = array<i32>} : memref<8x8x32xf32, #tpu.memory_space<vmem>>, vector<1x8x32xf32>,
    %c7_i32_105 = arith.constant 7 : i32
    %432 = arith.subi %c7_i32_105, %c4_i32 : i32
    %433 = arith.index_cast %432 : i32 to index
    %c0_106 = arith.constant 0 : index
    %c0_107 = arith.constant 0 : index
    %434 = vector.load %arg5[%433, %c0_106, %c0_107] : memref<8x8x128xf32, #tpu.memory_space<vmem>>, vector<1x8x128xf32>
    %435 = vector.shape_cast %434 : vector<1x8x128xf32> to vector<8x128xf32>
    %436 = arith.addi %22, %432 : i32
    %cst_108 = arith.constant dense<0.000000e+00> : vector<8x128xf32>
    %437 = tpu.matmul %378, %7, %cst_108 {dimension_numbers = #tpu.dot_dimension_numbers<[1], [0], [0], [1], [0, 0, 1, 1], [], []>} : vector<8x32xf32>, vector<32x128xf32>, vector<8x128xf32> -> vector<8x128xf32>
    %438 = vector.extract_strided_slice %435 {offsets = [0, 0], sizes = [8, 32], strides = [1, 1]} : vector<8x128xf32> to vector<8x32xf32>
    %439 = vector.extract_strided_slice %437 {offsets = [0, 0], sizes = [8, 32], strides = [1, 1]} : vector<8x128xf32> to vector<8x32xf32>
    %440 = arith.addf %438, %439 : vector<8x32xf32>
    %441 = arith.negf %440 : vector<8x32xf32>
    %442 = math.exp %441 : vector<8x32xf32>
    %cst_109 = arith.constant 1.000000e+00 : f32
    %443 = vector.broadcast %cst_109 : f32 to vector<8x32xf32>
    %444 = arith.addf %443, %442 : vector<8x32xf32>
    %445 = arith.divf %443, %444 : vector<8x32xf32>
    %446 = vector.extract_strided_slice %435 {offsets = [0, 32], sizes = [8, 32], strides = [1, 1]} : vector<8x128xf32> to vector<8x32xf32>
    %447 = vector.extract_strided_slice %437 {offsets = [0, 32], sizes = [8, 32], strides = [1, 1]} : vector<8x128xf32> to vector<8x32xf32>
    %448 = arith.addf %446, %447 : vector<8x32xf32>
    %449 = arith.negf %448 : vector<8x32xf32>
    %450 = math.exp %449 : vector<8x32xf32>
    %cst_110 = arith.constant 1.000000e+00 : f32
    %451 = vector.broadcast %cst_110 : f32 to vector<8x32xf32>
    %452 = arith.addf %451, %450 : vector<8x32xf32>
    %453 = arith.divf %451, %452 : vector<8x32xf32>
    %454 = vector.extract_strided_slice %435 {offsets = [0, 64], sizes = [8, 32], strides = [1, 1]} : vector<8x128xf32> to vector<8x32xf32>
    %455 = vector.extract_strided_slice %437 {offsets = [0, 64], sizes = [8, 32], strides = [1, 1]} : vector<8x128xf32> to vector<8x32xf32>
    %456 = arith.addf %455, %15 : vector<8x32xf32>
    %457 = arith.mulf %445, %456 : vector<8x32xf32>
    %458 = arith.addf %454, %457 : vector<8x32xf32>
    %459 = math.tanh %458 : vector<8x32xf32>
    %cst_111 = arith.constant 1.000000e+00 : f32
    %460 = vector.broadcast %cst_111 : f32 to vector<8x32xf32>
    %461 = arith.subf %460, %453 : vector<8x32xf32>
    %462 = arith.mulf %461, %459 : vector<8x32xf32>
    %463 = arith.mulf %453, %378 : vector<8x32xf32>
    %464 = arith.addf %462, %463 : vector<8x32xf32>
    %465 = vector.broadcast %436 : i32 to vector<8x1xi32>
    %466 = arith.cmpi slt, %465, %3 : vector<8x1xi32>
    %467 = vector.shape_cast %466 : vector<8x1xi1> to vector<8x1xi1>
    %468 = vector.broadcast %467 : vector<8x1xi1> to vector<8x32xi1>
    %469 = arith.select %468, %464, %378 : vector<8x32xi1>, vector<8x32xf32>
    %cst_112 = arith.constant 0.000000e+00 : f32
    %470 = vector.shape_cast %466 : vector<8x1xi1> to vector<8x1xi1>
    %471 = vector.broadcast %470 : vector<8x1xi1> to vector<8x32xi1>
    %472 = vector.broadcast %cst_112 : f32 to vector<8x32xf32>
    %473 = arith.select %471, %464, %472 : vector<8x32xi1>, vector<8x32xf32>
    %474 = arith.index_cast %432 : i32 to index
    %c0_113 = arith.constant 0 : index
    %c0_114 = arith.constant 0 : index
    %475 = vector.load %arg7[%474, %c0_113, %c0_114] : memref<8x8x32xf32, #tpu.memory_space<vmem>>, vector<1x8x32xf32>
    %476 = vector.shape_cast %475 : vector<1x8x32xf32> to vector<8x32xf32>
    %477 = vector.shape_cast %473 : vector<8x32xf32> to vector<1x8x32xf32>
    tpu.vector_store %arg7[%474, %c0_113, %c0_114], %477 {strides = array<i32>} : memref<8x8x32xf32, #tpu.memory_space<vmem>>, vector<1x8x32xf32>,
    %c5_i32 = arith.constant 5 : i32
    %478 = arith.index_cast %c5_i32 : i32 to index
    %c0_115 = arith.constant 0 : index
    %c0_116 = arith.constant 0 : index
    %479 = vector.load %arg4[%478, %c0_115, %c0_116] : memref<8x8x128xf32, #tpu.memory_space<vmem>>, vector<1x8x128xf32>
    %480 = vector.shape_cast %479 : vector<1x8x128xf32> to vector<8x128xf32>
    %481 = arith.addi %20, %c5_i32 : i32
    %cst_117 = arith.constant dense<0.000000e+00> : vector<8x128xf32>
    %482 = tpu.matmul %423, %5, %cst_117 {dimension_numbers = #tpu.dot_dimension_numbers<[1], [0], [0], [1], [0, 0, 1, 1], [], []>} : vector<8x32xf32>, vector<32x128xf32>, vector<8x128xf32> -> vector<8x128xf32>
    %483 = vector.extract_strided_slice %480 {offsets = [0, 0], sizes = [8, 32], strides = [1, 1]} : vector<8x128xf32> to vector<8x32xf32>
    %484 = vector.extract_strided_slice %482 {offsets = [0, 0], sizes = [8, 32], strides = [1, 1]} : vector<8x128xf32> to vector<8x32xf32>
    %485 = arith.addf %483, %484 : vector<8x32xf32>
    %486 = arith.negf %485 : vector<8x32xf32>
    %487 = math.exp %486 : vector<8x32xf32>
    %cst_118 = arith.constant 1.000000e+00 : f32
    %488 = vector.broadcast %cst_118 : f32 to vector<8x32xf32>
    %489 = arith.addf %488, %487 : vector<8x32xf32>
    %490 = arith.divf %488, %489 : vector<8x32xf32>
    %491 = vector.extract_strided_slice %480 {offsets = [0, 32], sizes = [8, 32], strides = [1, 1]} : vector<8x128xf32> to vector<8x32xf32>
    %492 = vector.extract_strided_slice %482 {offsets = [0, 32], sizes = [8, 32], strides = [1, 1]} : vector<8x128xf32> to vector<8x32xf32>
    %493 = arith.addf %491, %492 : vector<8x32xf32>
    %494 = arith.negf %493 : vector<8x32xf32>
    %495 = math.exp %494 : vector<8x32xf32>
    %cst_119 = arith.constant 1.000000e+00 : f32
    %496 = vector.broadcast %cst_119 : f32 to vector<8x32xf32>
    %497 = arith.addf %496, %495 : vector<8x32xf32>
    %498 = arith.divf %496, %497 : vector<8x32xf32>
    %499 = vector.extract_strided_slice %480 {offsets = [0, 64], sizes = [8, 32], strides = [1, 1]} : vector<8x128xf32> to vector<8x32xf32>
    %500 = vector.extract_strided_slice %482 {offsets = [0, 64], sizes = [8, 32], strides = [1, 1]} : vector<8x128xf32> to vector<8x32xf32>
    %501 = arith.addf %500, %11 : vector<8x32xf32>
    %502 = arith.mulf %490, %501 : vector<8x32xf32>
    %503 = arith.addf %499, %502 : vector<8x32xf32>
    %504 = math.tanh %503 : vector<8x32xf32>
    %cst_120 = arith.constant 1.000000e+00 : f32
    %505 = vector.broadcast %cst_120 : f32 to vector<8x32xf32>
    %506 = arith.subf %505, %498 : vector<8x32xf32>
    %507 = arith.mulf %506, %504 : vector<8x32xf32>
    %508 = arith.mulf %498, %423 : vector<8x32xf32>
    %509 = arith.addf %507, %508 : vector<8x32xf32>
    %510 = vector.broadcast %481 : i32 to vector<8x1xi32>
    %511 = arith.cmpi slt, %510, %3 : vector<8x1xi32>
    %512 = vector.shape_cast %511 : vector<8x1xi1> to vector<8x1xi1>
    %513 = vector.broadcast %512 : vector<8x1xi1> to vector<8x32xi1>
    %514 = arith.select %513, %509, %423 : vector<8x32xi1>, vector<8x32xf32>
    %cst_121 = arith.constant 0.000000e+00 : f32
    %515 = vector.shape_cast %511 : vector<8x1xi1> to vector<8x1xi1>
    %516 = vector.broadcast %515 : vector<8x1xi1> to vector<8x32xi1>
    %517 = vector.broadcast %cst_121 : f32 to vector<8x32xf32>
    %518 = arith.select %516, %509, %517 : vector<8x32xi1>, vector<8x32xf32>
    %519 = arith.index_cast %c5_i32 : i32 to index
    %c0_122 = arith.constant 0 : index
    %c0_123 = arith.constant 0 : index
    %520 = vector.load %arg6[%519, %c0_122, %c0_123] : memref<8x8x32xf32, #tpu.memory_space<vmem>>, vector<1x8x32xf32>
    %521 = vector.shape_cast %520 : vector<1x8x32xf32> to vector<8x32xf32>
    %522 = vector.shape_cast %518 : vector<8x32xf32> to vector<1x8x32xf32>
    tpu.vector_store %arg6[%519, %c0_122, %c0_123], %522 {strides = array<i32>} : memref<8x8x32xf32, #tpu.memory_space<vmem>>, vector<1x8x32xf32>,
    %c7_i32_124 = arith.constant 7 : i32
    %523 = arith.subi %c7_i32_124, %c5_i32 : i32
    %524 = arith.index_cast %523 : i32 to index
    %c0_125 = arith.constant 0 : index
    %c0_126 = arith.constant 0 : index
    %525 = vector.load %arg5[%524, %c0_125, %c0_126] : memref<8x8x128xf32, #tpu.memory_space<vmem>>, vector<1x8x128xf32>
    %526 = vector.shape_cast %525 : vector<1x8x128xf32> to vector<8x128xf32>
    %527 = arith.addi %22, %523 : i32
    %cst_127 = arith.constant dense<0.000000e+00> : vector<8x128xf32>
    %528 = tpu.matmul %469, %7, %cst_127 {dimension_numbers = #tpu.dot_dimension_numbers<[1], [0], [0], [1], [0, 0, 1, 1], [], []>} : vector<8x32xf32>, vector<32x128xf32>, vector<8x128xf32> -> vector<8x128xf32>
    %529 = vector.extract_strided_slice %526 {offsets = [0, 0], sizes = [8, 32], strides = [1, 1]} : vector<8x128xf32> to vector<8x32xf32>
    %530 = vector.extract_strided_slice %528 {offsets = [0, 0], sizes = [8, 32], strides = [1, 1]} : vector<8x128xf32> to vector<8x32xf32>
    %531 = arith.addf %529, %530 : vector<8x32xf32>
    %532 = arith.negf %531 : vector<8x32xf32>
    %533 = math.exp %532 : vector<8x32xf32>
    %cst_128 = arith.constant 1.000000e+00 : f32
    %534 = vector.broadcast %cst_128 : f32 to vector<8x32xf32>
    %535 = arith.addf %534, %533 : vector<8x32xf32>
    %536 = arith.divf %534, %535 : vector<8x32xf32>
    %537 = vector.extract_strided_slice %526 {offsets = [0, 32], sizes = [8, 32], strides = [1, 1]} : vector<8x128xf32> to vector<8x32xf32>
    %538 = vector.extract_strided_slice %528 {offsets = [0, 32], sizes = [8, 32], strides = [1, 1]} : vector<8x128xf32> to vector<8x32xf32>
    %539 = arith.addf %537, %538 : vector<8x32xf32>
    %540 = arith.negf %539 : vector<8x32xf32>
    %541 = math.exp %540 : vector<8x32xf32>
    %cst_129 = arith.constant 1.000000e+00 : f32
    %542 = vector.broadcast %cst_129 : f32 to vector<8x32xf32>
    %543 = arith.addf %542, %541 : vector<8x32xf32>
    %544 = arith.divf %542, %543 : vector<8x32xf32>
    %545 = vector.extract_strided_slice %526 {offsets = [0, 64], sizes = [8, 32], strides = [1, 1]} : vector<8x128xf32> to vector<8x32xf32>
    %546 = vector.extract_strided_slice %528 {offsets = [0, 64], sizes = [8, 32], strides = [1, 1]} : vector<8x128xf32> to vector<8x32xf32>
    %547 = arith.addf %546, %15 : vector<8x32xf32>
    %548 = arith.mulf %536, %547 : vector<8x32xf32>
    %549 = arith.addf %545, %548 : vector<8x32xf32>
    %550 = math.tanh %549 : vector<8x32xf32>
    %cst_130 = arith.constant 1.000000e+00 : f32
    %551 = vector.broadcast %cst_130 : f32 to vector<8x32xf32>
    %552 = arith.subf %551, %544 : vector<8x32xf32>
    %553 = arith.mulf %552, %550 : vector<8x32xf32>
    %554 = arith.mulf %544, %469 : vector<8x32xf32>
    %555 = arith.addf %553, %554 : vector<8x32xf32>
    %556 = vector.broadcast %527 : i32 to vector<8x1xi32>
    %557 = arith.cmpi slt, %556, %3 : vector<8x1xi32>
    %558 = vector.shape_cast %557 : vector<8x1xi1> to vector<8x1xi1>
    %559 = vector.broadcast %558 : vector<8x1xi1> to vector<8x32xi1>
    %560 = arith.select %559, %555, %469 : vector<8x32xi1>, vector<8x32xf32>
    %cst_131 = arith.constant 0.000000e+00 : f32
    %561 = vector.shape_cast %557 : vector<8x1xi1> to vector<8x1xi1>
    %562 = vector.broadcast %561 : vector<8x1xi1> to vector<8x32xi1>
    %563 = vector.broadcast %cst_131 : f32 to vector<8x32xf32>
    %564 = arith.select %562, %555, %563 : vector<8x32xi1>, vector<8x32xf32>
    %565 = arith.index_cast %523 : i32 to index
    %c0_132 = arith.constant 0 : index
    %c0_133 = arith.constant 0 : index
    %566 = vector.load %arg7[%565, %c0_132, %c0_133] : memref<8x8x32xf32, #tpu.memory_space<vmem>>, vector<1x8x32xf32>
    %567 = vector.shape_cast %566 : vector<1x8x32xf32> to vector<8x32xf32>
    %568 = vector.shape_cast %564 : vector<8x32xf32> to vector<1x8x32xf32>
    tpu.vector_store %arg7[%565, %c0_132, %c0_133], %568 {strides = array<i32>} : memref<8x8x32xf32, #tpu.memory_space<vmem>>, vector<1x8x32xf32>,
    %c6_i32 = arith.constant 6 : i32
    %569 = arith.index_cast %c6_i32 : i32 to index
    %c0_134 = arith.constant 0 : index
    %c0_135 = arith.constant 0 : index
    %570 = vector.load %arg4[%569, %c0_134, %c0_135] : memref<8x8x128xf32, #tpu.memory_space<vmem>>, vector<1x8x128xf32>
    %571 = vector.shape_cast %570 : vector<1x8x128xf32> to vector<8x128xf32>
    %572 = arith.addi %20, %c6_i32 : i32
    %cst_136 = arith.constant dense<0.000000e+00> : vector<8x128xf32>
    %573 = tpu.matmul %514, %5, %cst_136 {dimension_numbers = #tpu.dot_dimension_numbers<[1], [0], [0], [1], [0, 0, 1, 1], [], []>} : vector<8x32xf32>, vector<32x128xf32>, vector<8x128xf32> -> vector<8x128xf32>
    %574 = vector.extract_strided_slice %571 {offsets = [0, 0], sizes = [8, 32], strides = [1, 1]} : vector<8x128xf32> to vector<8x32xf32>
    %575 = vector.extract_strided_slice %573 {offsets = [0, 0], sizes = [8, 32], strides = [1, 1]} : vector<8x128xf32> to vector<8x32xf32>
    %576 = arith.addf %574, %575 : vector<8x32xf32>
    %577 = arith.negf %576 : vector<8x32xf32>
    %578 = math.exp %577 : vector<8x32xf32>
    %cst_137 = arith.constant 1.000000e+00 : f32
    %579 = vector.broadcast %cst_137 : f32 to vector<8x32xf32>
    %580 = arith.addf %579, %578 : vector<8x32xf32>
    %581 = arith.divf %579, %580 : vector<8x32xf32>
    %582 = vector.extract_strided_slice %571 {offsets = [0, 32], sizes = [8, 32], strides = [1, 1]} : vector<8x128xf32> to vector<8x32xf32>
    %583 = vector.extract_strided_slice %573 {offsets = [0, 32], sizes = [8, 32], strides = [1, 1]} : vector<8x128xf32> to vector<8x32xf32>
    %584 = arith.addf %582, %583 : vector<8x32xf32>
    %585 = arith.negf %584 : vector<8x32xf32>
    %586 = math.exp %585 : vector<8x32xf32>
    %cst_138 = arith.constant 1.000000e+00 : f32
    %587 = vector.broadcast %cst_138 : f32 to vector<8x32xf32>
    %588 = arith.addf %587, %586 : vector<8x32xf32>
    %589 = arith.divf %587, %588 : vector<8x32xf32>
    %590 = vector.extract_strided_slice %571 {offsets = [0, 64], sizes = [8, 32], strides = [1, 1]} : vector<8x128xf32> to vector<8x32xf32>
    %591 = vector.extract_strided_slice %573 {offsets = [0, 64], sizes = [8, 32], strides = [1, 1]} : vector<8x128xf32> to vector<8x32xf32>
    %592 = arith.addf %591, %11 : vector<8x32xf32>
    %593 = arith.mulf %581, %592 : vector<8x32xf32>
    %594 = arith.addf %590, %593 : vector<8x32xf32>
    %595 = math.tanh %594 : vector<8x32xf32>
    %cst_139 = arith.constant 1.000000e+00 : f32
    %596 = vector.broadcast %cst_139 : f32 to vector<8x32xf32>
    %597 = arith.subf %596, %589 : vector<8x32xf32>
    %598 = arith.mulf %597, %595 : vector<8x32xf32>
    %599 = arith.mulf %589, %514 : vector<8x32xf32>
    %600 = arith.addf %598, %599 : vector<8x32xf32>
    %601 = vector.broadcast %572 : i32 to vector<8x1xi32>
    %602 = arith.cmpi slt, %601, %3 : vector<8x1xi32>
    %603 = vector.shape_cast %602 : vector<8x1xi1> to vector<8x1xi1>
    %604 = vector.broadcast %603 : vector<8x1xi1> to vector<8x32xi1>
    %605 = arith.select %604, %600, %514 : vector<8x32xi1>, vector<8x32xf32>
    %cst_140 = arith.constant 0.000000e+00 : f32
    %606 = vector.shape_cast %602 : vector<8x1xi1> to vector<8x1xi1>
    %607 = vector.broadcast %606 : vector<8x1xi1> to vector<8x32xi1>
    %608 = vector.broadcast %cst_140 : f32 to vector<8x32xf32>
    %609 = arith.select %607, %600, %608 : vector<8x32xi1>, vector<8x32xf32>
    %610 = arith.index_cast %c6_i32 : i32 to index
    %c0_141 = arith.constant 0 : index
    %c0_142 = arith.constant 0 : index
    %611 = vector.load %arg6[%610, %c0_141, %c0_142] : memref<8x8x32xf32, #tpu.memory_space<vmem>>, vector<1x8x32xf32>
    %612 = vector.shape_cast %611 : vector<1x8x32xf32> to vector<8x32xf32>
    %613 = vector.shape_cast %609 : vector<8x32xf32> to vector<1x8x32xf32>
    tpu.vector_store %arg6[%610, %c0_141, %c0_142], %613 {strides = array<i32>} : memref<8x8x32xf32, #tpu.memory_space<vmem>>, vector<1x8x32xf32>,
    %c7_i32_143 = arith.constant 7 : i32
    %614 = arith.subi %c7_i32_143, %c6_i32 : i32
    %615 = arith.index_cast %614 : i32 to index
    %c0_144 = arith.constant 0 : index
    %c0_145 = arith.constant 0 : index
    %616 = vector.load %arg5[%615, %c0_144, %c0_145] : memref<8x8x128xf32, #tpu.memory_space<vmem>>, vector<1x8x128xf32>
    %617 = vector.shape_cast %616 : vector<1x8x128xf32> to vector<8x128xf32>
    %618 = arith.addi %22, %614 : i32
    %cst_146 = arith.constant dense<0.000000e+00> : vector<8x128xf32>
    %619 = tpu.matmul %560, %7, %cst_146 {dimension_numbers = #tpu.dot_dimension_numbers<[1], [0], [0], [1], [0, 0, 1, 1], [], []>} : vector<8x32xf32>, vector<32x128xf32>, vector<8x128xf32> -> vector<8x128xf32>
    %620 = vector.extract_strided_slice %617 {offsets = [0, 0], sizes = [8, 32], strides = [1, 1]} : vector<8x128xf32> to vector<8x32xf32>
    %621 = vector.extract_strided_slice %619 {offsets = [0, 0], sizes = [8, 32], strides = [1, 1]} : vector<8x128xf32> to vector<8x32xf32>
    %622 = arith.addf %620, %621 : vector<8x32xf32>
    %623 = arith.negf %622 : vector<8x32xf32>
    %624 = math.exp %623 : vector<8x32xf32>
    %cst_147 = arith.constant 1.000000e+00 : f32
    %625 = vector.broadcast %cst_147 : f32 to vector<8x32xf32>
    %626 = arith.addf %625, %624 : vector<8x32xf32>
    %627 = arith.divf %625, %626 : vector<8x32xf32>
    %628 = vector.extract_strided_slice %617 {offsets = [0, 32], sizes = [8, 32], strides = [1, 1]} : vector<8x128xf32> to vector<8x32xf32>
    %629 = vector.extract_strided_slice %619 {offsets = [0, 32], sizes = [8, 32], strides = [1, 1]} : vector<8x128xf32> to vector<8x32xf32>
    %630 = arith.addf %628, %629 : vector<8x32xf32>
    %631 = arith.negf %630 : vector<8x32xf32>
    %632 = math.exp %631 : vector<8x32xf32>
    %cst_148 = arith.constant 1.000000e+00 : f32
    %633 = vector.broadcast %cst_148 : f32 to vector<8x32xf32>
    %634 = arith.addf %633, %632 : vector<8x32xf32>
    %635 = arith.divf %633, %634 : vector<8x32xf32>
    %636 = vector.extract_strided_slice %617 {offsets = [0, 64], sizes = [8, 32], strides = [1, 1]} : vector<8x128xf32> to vector<8x32xf32>
    %637 = vector.extract_strided_slice %619 {offsets = [0, 64], sizes = [8, 32], strides = [1, 1]} : vector<8x128xf32> to vector<8x32xf32>
    %638 = arith.addf %637, %15 : vector<8x32xf32>
    %639 = arith.mulf %627, %638 : vector<8x32xf32>
    %640 = arith.addf %636, %639 : vector<8x32xf32>
    %641 = math.tanh %640 : vector<8x32xf32>
    %cst_149 = arith.constant 1.000000e+00 : f32
    %642 = vector.broadcast %cst_149 : f32 to vector<8x32xf32>
    %643 = arith.subf %642, %635 : vector<8x32xf32>
    %644 = arith.mulf %643, %641 : vector<8x32xf32>
    %645 = arith.mulf %635, %560 : vector<8x32xf32>
    %646 = arith.addf %644, %645 : vector<8x32xf32>
    %647 = vector.broadcast %618 : i32 to vector<8x1xi32>
    %648 = arith.cmpi slt, %647, %3 : vector<8x1xi32>
    %649 = vector.shape_cast %648 : vector<8x1xi1> to vector<8x1xi1>
    %650 = vector.broadcast %649 : vector<8x1xi1> to vector<8x32xi1>
    %651 = arith.select %650, %646, %560 : vector<8x32xi1>, vector<8x32xf32>
    %cst_150 = arith.constant 0.000000e+00 : f32
    %652 = vector.shape_cast %648 : vector<8x1xi1> to vector<8x1xi1>
    %653 = vector.broadcast %652 : vector<8x1xi1> to vector<8x32xi1>
    %654 = vector.broadcast %cst_150 : f32 to vector<8x32xf32>
    %655 = arith.select %653, %646, %654 : vector<8x32xi1>, vector<8x32xf32>
    %656 = arith.index_cast %614 : i32 to index
    %c0_151 = arith.constant 0 : index
    %c0_152 = arith.constant 0 : index
    %657 = vector.load %arg7[%656, %c0_151, %c0_152] : memref<8x8x32xf32, #tpu.memory_space<vmem>>, vector<1x8x32xf32>
    %658 = vector.shape_cast %657 : vector<1x8x32xf32> to vector<8x32xf32>
    %659 = vector.shape_cast %655 : vector<8x32xf32> to vector<1x8x32xf32>
    tpu.vector_store %arg7[%656, %c0_151, %c0_152], %659 {strides = array<i32>} : memref<8x8x32xf32, #tpu.memory_space<vmem>>, vector<1x8x32xf32>,
    %c7_i32_153 = arith.constant 7 : i32
    %660 = arith.index_cast %c7_i32_153 : i32 to index
    %c0_154 = arith.constant 0 : index
    %c0_155 = arith.constant 0 : index
    %661 = vector.load %arg4[%660, %c0_154, %c0_155] : memref<8x8x128xf32, #tpu.memory_space<vmem>>, vector<1x8x128xf32>
    %662 = vector.shape_cast %661 : vector<1x8x128xf32> to vector<8x128xf32>
    %663 = arith.addi %20, %c7_i32_153 : i32
    %cst_156 = arith.constant dense<0.000000e+00> : vector<8x128xf32>
    %664 = tpu.matmul %605, %5, %cst_156 {dimension_numbers = #tpu.dot_dimension_numbers<[1], [0], [0], [1], [0, 0, 1, 1], [], []>} : vector<8x32xf32>, vector<32x128xf32>, vector<8x128xf32> -> vector<8x128xf32>
    %665 = vector.extract_strided_slice %662 {offsets = [0, 0], sizes = [8, 32], strides = [1, 1]} : vector<8x128xf32> to vector<8x32xf32>
    %666 = vector.extract_strided_slice %664 {offsets = [0, 0], sizes = [8, 32], strides = [1, 1]} : vector<8x128xf32> to vector<8x32xf32>
    %667 = arith.addf %665, %666 : vector<8x32xf32>
    %668 = arith.negf %667 : vector<8x32xf32>
    %669 = math.exp %668 : vector<8x32xf32>
    %cst_157 = arith.constant 1.000000e+00 : f32
    %670 = vector.broadcast %cst_157 : f32 to vector<8x32xf32>
    %671 = arith.addf %670, %669 : vector<8x32xf32>
    %672 = arith.divf %670, %671 : vector<8x32xf32>
    %673 = vector.extract_strided_slice %662 {offsets = [0, 32], sizes = [8, 32], strides = [1, 1]} : vector<8x128xf32> to vector<8x32xf32>
    %674 = vector.extract_strided_slice %664 {offsets = [0, 32], sizes = [8, 32], strides = [1, 1]} : vector<8x128xf32> to vector<8x32xf32>
    %675 = arith.addf %673, %674 : vector<8x32xf32>
    %676 = arith.negf %675 : vector<8x32xf32>
    %677 = math.exp %676 : vector<8x32xf32>
    %cst_158 = arith.constant 1.000000e+00 : f32
    %678 = vector.broadcast %cst_158 : f32 to vector<8x32xf32>
    %679 = arith.addf %678, %677 : vector<8x32xf32>
    %680 = arith.divf %678, %679 : vector<8x32xf32>
    %681 = vector.extract_strided_slice %662 {offsets = [0, 64], sizes = [8, 32], strides = [1, 1]} : vector<8x128xf32> to vector<8x32xf32>
    %682 = vector.extract_strided_slice %664 {offsets = [0, 64], sizes = [8, 32], strides = [1, 1]} : vector<8x128xf32> to vector<8x32xf32>
    %683 = arith.addf %682, %11 : vector<8x32xf32>
    %684 = arith.mulf %672, %683 : vector<8x32xf32>
    %685 = arith.addf %681, %684 : vector<8x32xf32>
    %686 = math.tanh %685 : vector<8x32xf32>
    %cst_159 = arith.constant 1.000000e+00 : f32
    %687 = vector.broadcast %cst_159 : f32 to vector<8x32xf32>
    %688 = arith.subf %687, %680 : vector<8x32xf32>
    %689 = arith.mulf %688, %686 : vector<8x32xf32>
    %690 = arith.mulf %680, %605 : vector<8x32xf32>
    %691 = arith.addf %689, %690 : vector<8x32xf32>
    %692 = vector.broadcast %663 : i32 to vector<8x1xi32>
    %693 = arith.cmpi slt, %692, %3 : vector<8x1xi32>
    %694 = vector.shape_cast %693 : vector<8x1xi1> to vector<8x1xi1>
    %695 = vector.broadcast %694 : vector<8x1xi1> to vector<8x32xi1>
    %696 = arith.select %695, %691, %605 : vector<8x32xi1>, vector<8x32xf32>
    %cst_160 = arith.constant 0.000000e+00 : f32
    %697 = vector.shape_cast %693 : vector<8x1xi1> to vector<8x1xi1>
    %698 = vector.broadcast %697 : vector<8x1xi1> to vector<8x32xi1>
    %699 = vector.broadcast %cst_160 : f32 to vector<8x32xf32>
    %700 = arith.select %698, %691, %699 : vector<8x32xi1>, vector<8x32xf32>
    %701 = arith.index_cast %c7_i32_153 : i32 to index
    %c0_161 = arith.constant 0 : index
    %c0_162 = arith.constant 0 : index
    %702 = vector.load %arg6[%701, %c0_161, %c0_162] : memref<8x8x32xf32, #tpu.memory_space<vmem>>, vector<1x8x32xf32>
    %703 = vector.shape_cast %702 : vector<1x8x32xf32> to vector<8x32xf32>
    %704 = vector.shape_cast %700 : vector<8x32xf32> to vector<1x8x32xf32>
    tpu.vector_store %arg6[%701, %c0_161, %c0_162], %704 {strides = array<i32>} : memref<8x8x32xf32, #tpu.memory_space<vmem>>, vector<1x8x32xf32>,
    %c7_i32_163 = arith.constant 7 : i32
    %705 = arith.subi %c7_i32_163, %c7_i32_153 : i32
    %706 = arith.index_cast %705 : i32 to index
    %c0_164 = arith.constant 0 : index
    %c0_165 = arith.constant 0 : index
    %707 = vector.load %arg5[%706, %c0_164, %c0_165] : memref<8x8x128xf32, #tpu.memory_space<vmem>>, vector<1x8x128xf32>
    %708 = vector.shape_cast %707 : vector<1x8x128xf32> to vector<8x128xf32>
    %709 = arith.addi %22, %705 : i32
    %cst_166 = arith.constant dense<0.000000e+00> : vector<8x128xf32>
    %710 = tpu.matmul %651, %7, %cst_166 {dimension_numbers = #tpu.dot_dimension_numbers<[1], [0], [0], [1], [0, 0, 1, 1], [], []>} : vector<8x32xf32>, vector<32x128xf32>, vector<8x128xf32> -> vector<8x128xf32>
    %711 = vector.extract_strided_slice %708 {offsets = [0, 0], sizes = [8, 32], strides = [1, 1]} : vector<8x128xf32> to vector<8x32xf32>
    %712 = vector.extract_strided_slice %710 {offsets = [0, 0], sizes = [8, 32], strides = [1, 1]} : vector<8x128xf32> to vector<8x32xf32>
    %713 = arith.addf %711, %712 : vector<8x32xf32>
    %714 = arith.negf %713 : vector<8x32xf32>
    %715 = math.exp %714 : vector<8x32xf32>
    %cst_167 = arith.constant 1.000000e+00 : f32
    %716 = vector.broadcast %cst_167 : f32 to vector<8x32xf32>
    %717 = arith.addf %716, %715 : vector<8x32xf32>
    %718 = arith.divf %716, %717 : vector<8x32xf32>
    %719 = vector.extract_strided_slice %708 {offsets = [0, 32], sizes = [8, 32], strides = [1, 1]} : vector<8x128xf32> to vector<8x32xf32>
    %720 = vector.extract_strided_slice %710 {offsets = [0, 32], sizes = [8, 32], strides = [1, 1]} : vector<8x128xf32> to vector<8x32xf32>
    %721 = arith.addf %719, %720 : vector<8x32xf32>
    %722 = arith.negf %721 : vector<8x32xf32>
    %723 = math.exp %722 : vector<8x32xf32>
    %cst_168 = arith.constant 1.000000e+00 : f32
    %724 = vector.broadcast %cst_168 : f32 to vector<8x32xf32>
    %725 = arith.addf %724, %723 : vector<8x32xf32>
    %726 = arith.divf %724, %725 : vector<8x32xf32>
    %727 = vector.extract_strided_slice %708 {offsets = [0, 64], sizes = [8, 32], strides = [1, 1]} : vector<8x128xf32> to vector<8x32xf32>
    %728 = vector.extract_strided_slice %710 {offsets = [0, 64], sizes = [8, 32], strides = [1, 1]} : vector<8x128xf32> to vector<8x32xf32>
    %729 = arith.addf %728, %15 : vector<8x32xf32>
    %730 = arith.mulf %718, %729 : vector<8x32xf32>
    %731 = arith.addf %727, %730 : vector<8x32xf32>
    %732 = math.tanh %731 : vector<8x32xf32>
    %cst_169 = arith.constant 1.000000e+00 : f32
    %733 = vector.broadcast %cst_169 : f32 to vector<8x32xf32>
    %734 = arith.subf %733, %726 : vector<8x32xf32>
    %735 = arith.mulf %734, %732 : vector<8x32xf32>
    %736 = arith.mulf %726, %651 : vector<8x32xf32>
    %737 = arith.addf %735, %736 : vector<8x32xf32>
    %738 = vector.broadcast %709 : i32 to vector<8x1xi32>
    %739 = arith.cmpi slt, %738, %3 : vector<8x1xi32>
    %740 = vector.shape_cast %739 : vector<8x1xi1> to vector<8x1xi1>
    %741 = vector.broadcast %740 : vector<8x1xi1> to vector<8x32xi1>
    %742 = arith.select %741, %737, %651 : vector<8x32xi1>, vector<8x32xf32>
    %cst_170 = arith.constant 0.000000e+00 : f32
    %743 = vector.shape_cast %739 : vector<8x1xi1> to vector<8x1xi1>
    %744 = vector.broadcast %743 : vector<8x1xi1> to vector<8x32xi1>
    %745 = vector.broadcast %cst_170 : f32 to vector<8x32xf32>
    %746 = arith.select %744, %737, %745 : vector<8x32xi1>, vector<8x32xf32>
    %747 = arith.index_cast %705 : i32 to index
    %c0_171 = arith.constant 0 : index
    %c0_172 = arith.constant 0 : index
    %748 = vector.load %arg7[%747, %c0_171, %c0_172] : memref<8x8x32xf32, #tpu.memory_space<vmem>>, vector<1x8x32xf32>
    %749 = vector.shape_cast %748 : vector<1x8x32xf32> to vector<8x32xf32>
    %750 = vector.shape_cast %746 : vector<8x32xf32> to vector<1x8x32xf32>
    tpu.vector_store %arg7[%747, %c0_171, %c0_172], %750 {strides = array<i32>} : memref<8x8x32xf32, #tpu.memory_space<vmem>>, vector<1x8x32xf32>,
    %c8_i32_173 = arith.constant 8 : i32
    %c0_174 = arith.constant 0 : index
    %c0_175 = arith.constant 0 : index
    %c0_176 = arith.constant 0 : index
    %751 = vector.load %arg8[%c0_174, %c0_175, %c0_176] : memref<2x8x32xf32, #tpu.memory_space<vmem>>, vector<1x8x32xf32>
    %752 = vector.shape_cast %751 : vector<1x8x32xf32> to vector<8x32xf32>
    %753 = vector.shape_cast %696 : vector<8x32xf32> to vector<1x8x32xf32>
    tpu.vector_store %arg8[%c0_174, %c0_175, %c0_176], %753 {strides = array<i32>} : memref<2x8x32xf32, #tpu.memory_space<vmem>>, vector<1x8x32xf32>,
    %c1_177 = arith.constant 1 : index
    %c0_178 = arith.constant 0 : index
    %c0_179 = arith.constant 0 : index
    %754 = vector.load %arg8[%c1_177, %c0_178, %c0_179] : memref<2x8x32xf32, #tpu.memory_space<vmem>>, vector<1x8x32xf32>
    %755 = vector.shape_cast %754 : vector<1x8x32xf32> to vector<8x32xf32>
    %756 = vector.shape_cast %742 : vector<8x32xf32> to vector<1x8x32xf32>
    tpu.vector_store %arg8[%c1_177, %c0_178, %c0_179], %756 {strides = array<i32>} : memref<2x8x32xf32, #tpu.memory_space<vmem>>, vector<1x8x32xf32>,
    return
  }
  func.func @transform_0(%arg0: i32) -> (i32, i32) {
    %c0_i32 = arith.constant 0 : i32
    %c0_i32_0 = arith.constant 0 : i32
    %c0_i32_1 = arith.constant 0 : i32
    return %c0_i32, %c0_i32_0 : i32, i32
  }
  func.func @transform_1(%arg0: i32) -> (i32, i32, i32) {
    %c0_i32 = arith.constant 0 : i32
    %c0_i32_0 = arith.constant 0 : i32
    %c0_i32_1 = arith.constant 0 : i32
    %c0_i32_2 = arith.constant 0 : i32
    return %c0_i32, %c0_i32_0, %c0_i32_1 : i32, i32, i32
  }
  func.func @transform_2(%arg0: i32) -> (i32, i32, i32) {
    %c0_i32 = arith.constant 0 : i32
    %c0_i32_0 = arith.constant 0 : i32
    %c0_i32_1 = arith.constant 0 : i32
    %c0_i32_2 = arith.constant 0 : i32
    return %c0_i32, %c0_i32_0, %c0_i32_1 : i32, i32, i32
  }
  func.func @transform_3(%arg0: i32) -> (i32, i32, i32) {
    %c0_i32 = arith.constant 0 : i32
    %c0_i32_0 = arith.constant 0 : i32
    %c0_i32_1 = arith.constant 0 : i32
    return %arg0, %c0_i32, %c0_i32_0 : i32, i32, i32
  }
  func.func @transform_4(%arg0: i32) -> (i32, i32, i32) {
    %c0_i32 = arith.constant 0 : i32
    %0 = arith.subi %c0_i32, %arg0 : i32
    %c0_i32_0 = arith.constant 0 : i32
    %c0_i32_1 = arith.constant 0 : i32
    %c0_i32_2 = arith.constant 0 : i32
    return %0, %c0_i32_0, %c0_i32_1 : i32, i32, i32
  }
  func.func @transform_5(%arg0: i32) -> (i32, i32, i32) {
    %c0_i32 = arith.constant 0 : i32
    %c0_i32_0 = arith.constant 0 : i32
    %c0_i32_1 = arith.constant 0 : i32
    return %arg0, %c0_i32, %c0_i32_0 : i32, i32, i32
  }
  func.func @transform_6(%arg0: i32) -> (i32, i32, i32) {
    %c0_i32 = arith.constant 0 : i32
    %0 = arith.subi %c0_i32, %arg0 : i32
    %c0_i32_0 = arith.constant 0 : i32
    %c0_i32_1 = arith.constant 0 : i32
    %c0_i32_2 = arith.constant 0 : i32
    return %0, %c0_i32_0, %c0_i32_1 : i32, i32, i32
  }
}

</mosaic_0001>

<bundles_post_ra>
// kernel: tpu_custom_call.1
= control target key start
LH: loop header
LB: loop body
LE: loop exit
PB: predicated region body
PF: predicated region fallthrough
CT: control target
= control target key end

     0   :  { %12 = vsyncpa [#allocation4], 0  ;;  %s2261_s0 = inlined_call_operand.vmem [shape: s32[8,1], index: 0, kind: input, shape index: {}]   ;;  %s2262_s1 = inlined_call_operand.hbm [shape: f32[2,32,128], index: 1, kind: input, shape index: {}]   ;;  %s2263_s2 = inlined_call_operand.vmem [shape: f32[2,1,32], index: 2, kind: input, shape index: {}]   ;;  %s2264_s3 = inlined_call_operand.hbm [shape: f32[8,8,128], index: 3, kind: input, shape index: {}]   ;;  %s2265_s4 = inlined_call_operand.hbm [shape: f32[8,8,128], index: 4, kind: input, shape index: {}]   ;;  %s2266_s5 = inlined_call_operand.hbm [shape: f32[8,8,32], index: 5, kind: output, shape index: {0}]   ;;  %s2267_s6 = inlined_call_operand.hbm [shape: f32[8,8,32], index: 6, kind: output, shape index: {1}]  }
   0x1   :  { %13 = vsyncpa [#allocation7], 0 }
   0x2   :  { %14 = vsyncpa [#allocation5], 0 }
   0x3   :  { %15 = vsyncpa [#allocation11], 0  ;;  %s37_s23 = sshll.u32 %s2264_s3, 4  ;;  %s1786_s24 = smov [#allocation6]   ;;  %s38_s23 = int_to_ptr.hbm [resolvable:$true] %s37_s23 }
   0x4   :  { %s39_s25 = sshll.u32 %s1786_s24, 4  ;;  %s22_s28 = sshll.u32 %s2262_s1, 4  ;;  %s40_s25 = int_to_ptr.vmem [resolvable:$true] %s39_s25  ;;  %s23_s28 = int_to_ptr.hbm [resolvable:$true] %s22_s28 }
   0x5   :  { %s1787_s29 = smov 128   ;;  %s1788_s30 = smov 8  }
   0x6   :  { %45 = dma.hbm_to_vmem [thread:$0]  %s38_s23, 1024, %s40_s25, [#allocation7], %s1787_s29, %s1787_s29, %s1788_s30  }
   0x7   :  { %s1789_s7 = smov [#allocation3]   ;;  %s54_s3 = sshll.u32 %s2265_s4, 4  ;;  %s55_s3 = int_to_ptr.hbm [resolvable:$true] %s54_s3 }
   0x8   :  { %s24_s8 = sshll.u32 %s1789_s7, 4  ;;  %s1790_s1 = smov [#allocation8]   ;;  %s25_s8 = int_to_ptr.vmem [resolvable:$true] %s24_s8 }
   0x9   :  { %30 = dma.hbm_to_vmem [thread:$0]  %s23_s28, 1024, %s25_s8, [#allocation4], %s1787_s29, %s1787_s29, %s1788_s30  }
   0xa   :  { %s56_s11 = sshll.u32 %s1790_s1, 4  ;;  %s57_s11 = int_to_ptr.vmem [resolvable:$true] %s56_s11 }
   0xb   :  { %62 = dma.hbm_to_vmem [thread:$0]  %s55_s3, 1024, %s57_s11, [#allocation7], %s1787_s29, %s1787_s29, %s1788_s30  }
   0xc   :  { %1778 = dma.done.wait [#allocation4], 1024  }
   0xd   :  { %1779 = vsyncadd [#allocation4], 4294966272 }
   0xe   :  { %1780 = dma.done.wait [#allocation7], 2048  }
   0xf   :  { %1781 = vsyncadd [#allocation7], 4294965248  ;;  %vm83_vm0 = vcmask 261120   ;;  %v1791_v0 = vmov 0.0   ;;  %v1853_v1 = vld [vmem:[#allocation3 + $0x18] sm:$0xff]  ;;  %v1855_v2 = vld [vmem:[#allocation3 + $0x10] sm:$0xff] }
  0x10   :  { %84 = vst.msk [vmem:[#allocation2] sm:$0xff] %vm83_vm0, %v1791_v0  ;;  %126 = vmatpush.msra.mxu0 %v1853_v1  ;;  %v1858_v3 = vld [vmem:[#allocation3 + $0x38] sm:$0xff]  ;;  %301 = vmatpush.msra.mxu2 %v1853_v1  ;;  %v1861_v4 = vld [vmem:[#allocation3 + $0x8] sm:$0xff]  ;;  %v1864_v5 = vld [vmem:[#allocation3 + $0x30] sm:$0xff]  ;;  %s1792_s13 = smov 64   ;;  %v1794_v54 = vmov 0  }
  0x11   :  { %85 = vst.msk [vmem:[#allocation2 + $0x8] sm:$0xff] %vm83_vm0, %v1791_v0  ;;  %212 = vmatpush.msra.mxu1 %v1858_v3  ;;  %384 = vmatpush.msra.mxu3 %v1858_v3  ;;  %v1868_v6 = vld [vmem:[#allocation3 + $0x28] sm:$0xff]  ;;  %v1560_v7 = vld [vmem:[%s2263_s2] ss:$0 sm:$0xff]  ;;  %v1874_v8 = vld [vmem:[#allocation3] sm:$0xff]  ;;  %s1796_s18 = smov [#allocation10]  }
  0x12   :  { %127 = vmatpush.msra.mxu0 %v1855_v2  ;;  %302 = vmatpush.msra.mxu2 %v1855_v2  ;;  %v1879_v10 = vld [vmem:[#allocation3 + $0x20] sm:$0xff]  ;;  %v1561_v12 = vld [vmem:[%s2263_s2 + $0x1] ss:$0 sm:$0xff]  ;;  %s1793_s2 = smov 32   ;;  %v195_v22 = vld [vmem:[#allocation8 + $0x38] sm:$0xff]  ;;  %s1471_s19 = sshll.u32 %s1796_s18, 4  ;;  %s1472_s19 = int_to_ptr.vmem [resolvable:$true] %s1471_s19 }
  0x13   :  { %213 = vmatpush.msra.mxu1 %v1864_v5  ;;  %385 = vmatpush.msra.mxu3 %v1864_v5  ;;  %v109_v19 = vld [vmem:[#allocation6] sm:$0xff]  ;;  %v1936_v53 = vld [vmem:[%s2261_s0] sm:$0xff]  ;;  %s1795_s0 = smov 96   ;;  %s1473_s22 = sshll.u32 %s2267_s6, 4  ;;  %s1474_s22 = int_to_ptr.hbm [resolvable:$true] %s1473_s22 }
  0x14   :  { %128 = vmatpush.msra.mxu0 %v1861_v4  ;;  %154 = vrot.lane.b32.xlu0 %v1560_v7, %s1792_s13  ;;  %vm1499_vm9 = vcmp.gt.s32.totalorder %v1936_v53, 0  ;;  %vm1502_vm10 = vcmp.gt.s32.totalorder %v1936_v53, 7  ;;  %s1797_s23 = smov [#allocation9]   ;;  %s1456_s27 = sshll.u32 %s2266_s5, 4  ;;  %s1457_s27 = int_to_ptr.hbm [resolvable:$true] %s1456_s27 }
  0x15   :  { %214 = vmatpush.msra.mxu1 %v1868_v6  ;;  %303 = vmatpush.msra.mxu2 %v1861_v4  ;;  %v1941_v55 = vsel %vm1499_vm9, 1, %v1794_v54  ;;  %v1952_v62 = vsel %vm1502_vm10, 1, %v1794_v54  ;;  %s1454_s24 = sshll.u32 %s1797_s23, 4  ;;  %s1455_s24 = int_to_ptr.vmem [resolvable:$true] %s1454_s24 }
  0x16   :  { %129 = vmatpush.msra.mxu0 %v1874_v8  ;;  %386 = vmatpush.msra.mxu3 %v1868_v6 }
  0x17   :  { %v103_v9 = vld [vmem:[#allocation2] sm:$0xff]  ;;  %215 = vmatpush.msra.mxu1 %v1879_v10  ;;  %304 = vmatpush.msra.mxu2 %v1874_v8 }
  0x18   :  { %v1883_v11 = vld [vmem:[#allocation2 + $0x8] sm:$0xff]  ;;  %1497 = vmatmul.msk.f32.vlgmr.msra.gmra.mxu0 %vm83_vm0, %v103_v9  ;;  %387 = vmatpush.msra.mxu3 %v1879_v10 }
  0x19   :  { %1500 = vmatmul.msk.f32.vlgmr.msra.gmra.mxu1 %vm83_vm0, %v1883_v11  ;;  %467 = vmatpush.msrb.mxu0 %v1853_v1 }
  0x1a   :  { %550 = vmatpush.msrb.mxu1 %v1858_v3  ;;  %633 = vmatpush.msrb.mxu2 %v1853_v1 }
  0x1b   :  { %716 = vmatpush.msrb.mxu3 %v1858_v3  ;;  %468 = vmatpush.msrb.mxu0 %v1855_v2 }
  0x1c   :  { %551 = vmatpush.msrb.mxu1 %v1864_v5  ;;  %240 = vrot.lane.b32.xlu0 %v1561_v12, %s1792_s13 }
  0x1d   :  { %634 = vmatpush.msrb.mxu2 %v1855_v2  ;;  %469 = vmatpush.msrb.mxu0 %v1861_v4 }
  0x1e   :  { %552 = vmatpush.msrb.mxu1 %v1868_v6  ;;  %717 = vmatpush.msrb.mxu3 %v1864_v5 }
  0x1f   :  { %635 = vmatpush.msrb.mxu2 %v1861_v4  ;;  %470 = vmatpush.msrb.mxu0 %v1874_v8 }
  0x20   :  { %553 = vmatpush.msrb.mxu1 %v1879_v10  ;;  %718 = vmatpush.msrb.mxu3 %v1868_v6 }
  0x21   :  { %636 = vmatpush.msrb.mxu2 %v1874_v8  ;;  %799 = vmatpush.msra.mxu0 %v1853_v1 }
  0x22   :  { %882 = vmatpush.msra.mxu1 %v1858_v3  ;;  %719 = vmatpush.msrb.mxu3 %v1879_v10 }
  0x23   :  { %800 = vmatpush.msra.mxu0 %v1855_v2  ;;  %1557 = vset.pattern.permute.xlu1 %v1794_v54 }
  0x24   :  { %883 = vmatpush.msra.mxu1 %v1864_v5  ;;  %1558 = vset.pattern.permute.xlu2 %v1794_v54 }
  0x25   :  { %801 = vmatpush.msra.mxu0 %v1861_v4  ;;  %1559 = vset.pattern.permute.xlu0 %v1794_v54 }
  0x26   :  { %884 = vmatpush.msra.mxu1 %v1868_v6 }
  0x27   :  { %802 = vmatpush.msra.mxu0 %v1874_v8 }
  0x28   :  { %885 = vmatpush.msra.mxu1 %v1879_v10 }
  0x86   :  { %v1922_v13 = vpop.permute.xlu0 %154 }
  0x8e   :  { %v1926_v16 = vpop.permute.xlu0 %240 }
  0x95   :  { %v131_v14 = vpop.f32.mrf.mxu0 }
  0x96   :  { %v157_v15 = vadd.f32 %v1922_v13, %v131_v14  ;;  %v217_v17 = vpop.f32.mrf.mxu1  ;;  %v134_v20 = vadd.f32 %v131_v14, %v109_v19 }
  0x97   :  { %v243_v18 = vadd.f32 %v1926_v16, %v217_v17  ;;  %v220_v23 = vadd.f32 %v217_v17, %v195_v22 }
  0x98   :  { %159 = vrot.lane.b32.xlu1 %v157_v15, %s1792_s13  ;;  %v1498_v21 = vmul.f32 -1.442695, %v134_v20 }
  0x99   :  { %v1501_v24 = vmul.f32 -1.442695, %v220_v23 }
  0x9a   :  { %1562 = vpow2.f32 %v1498_v21 }
  0x9b   :  { %1564 = vpow2.f32 %v1501_v24 }
  0xa0   :  { %245 = vrot.lane.b32.xlu1 %v243_v18, %s1792_s13  ;;  %v1563_v25 = vpop.eup %1562 }
  0xa1   :  { %v138_v26 = vadd.f32 1.0, %v1563_v25  ;;  %v1565_v27 = vpop.eup %1564 }
  0xa2   :  { %v224_v28 = vadd.f32 1.0, %v1565_v27 }
  0xa3   :  { %1566 = vrcp.f32 %v138_v26  ;;  %v150_v37 = vand.u32 2147483648, %v138_v26  ;;  %vm144_vm2 = vweird.f32 %v138_v26  ;;  %v148_v38 = vand.u32 2147483647, %v138_v26 }
  0xa4   :  { %1568 = vrcp.f32 %v224_v28  ;;  %vm230_vm5 = vweird.f32 %v224_v28  ;;  %v236_v44 = vand.u32 2147483648, %v224_v28  ;;  %v234_v47 = vand.u32 2147483647, %v224_v28 }
  0xa5   :  { %v151_v41 = vor.u32 1.1754944e-38, %v150_v37  ;;  %vm149_vm4 = vcmp.eq.f32.partialorder %v148_v38, 8.507059e+37 }
  0xa6   :  { %v237_v48 = vor.u32 1.1754944e-38, %v236_v44  ;;  %vm235_vm8 = vcmp.eq.f32.partialorder %v234_v47, 8.507059e+37 }
  0xa8   :  { %175 = vrot.lane.b32.xlu1 %v103_v9, %s1793_s2 }
  0xa9   :  { %v1567_v29 = vpop.eup %1566 }
  0xaa   :  { %v140_v30 = vmul.f32 %v1567_v29, %v138_v26  ;;  %v1569_v32 = vpop.eup %1568  ;;  %vm145_vm1 = vweird.f32 %v1567_v29 }
  0xab   :  { %v226_v34 = vmul.f32 %v1569_v32, %v224_v28  ;;  %vm146_vm3 = vmor %vm144_vm2, %vm145_vm1  ;;  %vm231_vm6 = vweird.f32 %v1569_v32 }
  0xac   :  { %v141_v31 = vsub.f32 1.0, %v140_v30  ;;  %vm232_vm7 = vmor %vm230_vm5, %vm231_vm6  ;;  %vm1505_vm6 = vcmp.gt.s32.totalorder %v1936_v53, 1 }
  0xad   :  { %v227_v36 = vsub.f32 1.0, %v226_v34 }
  0xae   :  { %v142_v33 = vmul.f32 %v1567_v29, %v141_v31 }
  0xaf   :  { %v228_v40 = vmul.f32 %v1569_v32, %v227_v36 }
  0xb0   :  { %v143_v35 = vadd.f32 %v1567_v29, %v142_v33  ;;  %184 = vperm.xlu1 %1557, %v1941_v55   ;;  %v282_v33 = vld [vmem:[#allocation6 + $0x8] sm:$0xff] }
  0xb1   :  { %v229_v46 = vadd.f32 %v1569_v32, %v228_v40 }
  0xb2   :  { %v147_v39 = vsel %vm146_vm3, %v1567_v29, %v143_v35 }
  0xb3   :  { %v152_v43 = vsel %vm149_vm4, %v151_v41, %v147_v39  ;;  %v233_v49 = vsel %vm232_vm7, %v1569_v32, %v229_v46  ;;  %v365_v39 = vld [vmem:[#allocation8 + $0x30] sm:$0xff]  ;;  %vm1508_vm7 = vcmp.gt.s32.totalorder %v1936_v53, 6 }
  0xb4   :  { %v238_v50 = vsel %vm235_vm8, %v237_v48, %v233_v49  ;;  %v169_v7 = vsub.f32 1.0, %v152_v43 }
 0x10a   :  { %v160_v42 = vpop.permute.xlu1 %159 }
 0x10b   :  { %v162_v45 = vmul.f32 %v160_v42, %v152_v43 }
 0x10d   :  { %164 = vrot.lane.b32.xlu2 %v162_v45, %s1792_s13 }
 0x112   :  { %v246_v51 = vpop.permute.xlu1 %245 }
 0x113   :  { %v248_v52 = vmul.f32 %v246_v51, %v238_v50 }
 0x115   :  { %250 = vrot.lane.b32.xlu2 %v248_v52, %s1792_s13 }
 0x11a   :  { %v176_v63 = vpop.permute.xlu1 %175 }
 0x11b   :  { %v178_v14 = vmul.f32 %v176_v63, %v152_v43 }
 0x122   :  { %v185_v9 = vpop.permute.xlu1 %184 }
 0x123   :  { %vm186_vm11 = vcmp.eq.s32.totalorder %v185_v9, 1 }
 0x167   :  { %v165_v56 = vpop.permute.xlu2 %164 }
 0x168   :  { %v167_v57 = vadd.f32 %v165_v56, %v109_v19  ;;  %v255_v19 = vsub.f32 1.0, %v238_v50 }
 0x16a   :  { %1570 = vtanh.f32 %v167_v57 }
 0x16f   :  { %v251_v58 = vpop.permute.xlu2 %250 }
 0x170   :  { %v1571_v59 = vpop.eup %1570  ;;  %v253_v60 = vadd.f32 %v251_v58, %v195_v22 }
 0x171   :  { %171 = vrot.lane.b32.xlu0 %v1571_v59, %s1795_s0 }
 0x172   :  { %1572 = vtanh.f32 %v253_v60 }
 0x178   :  { %v1573_v61 = vpop.eup %1572 }
 0x179   :  { %261 = vrot.lane.b32.xlu0 %v1883_v11, %s1793_s2  ;;  %257 = vrot.lane.b32.xlu2 %v1573_v61, %s1795_s0 }
 0x181   :  { %270 = vperm.xlu2 %1558, %v1952_v62  }
 0x1d3   :  { %v258_v0 = vpop.permute.xlu2 %257 }
 0x1d4   :  { %v260_v22 = vmul.f32 %v258_v0, %v255_v19  ;;  %v1985_v19 = vsel %vm1505_vm6, 1, %v1794_v54 }
 0x1db   :  { %v271_v20 = vpop.permute.xlu2 %270 }
 0x1dc   :  { %vm272_vm12 = vcmp.eq.s32.totalorder %v271_v20, 1 }
 0x1e3   :  { %v172_v12 = vpop.permute.xlu0 %171 }
 0x1e4   :  { %v174_v15 = vmul.f32 %v172_v12, %v169_v7 }
 0x1e6   :  { %v179_v17 = vadd.f32 %v178_v14, %v174_v15 }
 0x1e8   :  { %v1955_v18 = vsel %vm186_vm11, %v179_v17, 0.0  ;;  %v1957_v11 = vsel %vm186_vm11, %v179_v17, %v176_v63 }
 0x1e9   :  { %285 = vrot.lane.b32.xlu0 %v1957_v11, %s1795_s0 }
 0x1eb   :  { %v262_v21 = vpop.permute.xlu0 %261 }
 0x1ec   :  { %v264_v23 = vmul.f32 %v262_v21, %v238_v50 }
 0x1ee   :  { %v265_v24 = vadd.f32 %v264_v23, %v260_v22 }
 0x1f0   :  { %v1961_v25 = vsel %vm272_vm12, %v265_v24, 0.0  ;;  %v1963_v26 = vsel %vm272_vm12, %v265_v24, %v262_v21 }
 0x1f1   :  { %368 = vrot.lane.b32.xlu1 %v1963_v26, %s1795_s0 }
 0x25b   :  { %v286_v27 = vpop.permute.xlu0 %285 }
 0x25c   :  { %1503 = vmatmul.msk.f32.vlgmr.msra.gmra.mxu2 %vm83_vm0, %v286_v27  ;;  %v1991_v27 = vsel %vm1508_vm7, 1, %v1794_v54 }
 0x25d   :  { %965 = vmatpush.msra.mxu2 %v1853_v1 }
 0x25f   :  { %966 = vmatpush.msra.mxu2 %v1855_v2 }
 0x261   :  { %967 = vmatpush.msra.mxu2 %v1861_v4 }
 0x263   :  { %v369_v28 = vpop.permute.xlu1 %368  ;;  %968 = vmatpush.msra.mxu2 %v1874_v8 }
 0x264   :  { %1506 = vmatmul.msk.f32.vlgmr.msra.gmra.mxu3 %vm83_vm0, %v369_v28 }
 0x265   :  { %1048 = vmatpush.msra.mxu3 %v1858_v3 }
 0x267   :  { %1049 = vmatpush.msra.mxu3 %v1864_v5 }
 0x269   :  { %1050 = vmatpush.msra.mxu3 %v1868_v6 }
 0x26b   :  { %1051 = vmatpush.msra.mxu3 %v1879_v10 }
 0x2df   :  { %v306_v29 = vpop.f32.mrf.mxu2 }
 0x2e0   :  { %v329_v30 = vadd.f32 %v306_v29, %v1922_v13  ;;  %v309_v34 = vadd.f32 %v306_v29, %v282_v33 }
 0x2e2   :  { %331 = vrot.lane.b32.xlu2 %v329_v30, %s1792_s13  ;;  %v1504_v35 = vmul.f32 -1.442695, %v309_v34 }
 0x2e4   :  { %1574 = vpow2.f32 %v1504_v35 }
 0x2e7   :  { %v389_v31 = vpop.f32.mrf.mxu3 }
 0x2e8   :  { %v412_v32 = vadd.f32 %v389_v31, %v1926_v16  ;;  %v392_v41 = vadd.f32 %v389_v31, %v365_v39 }
 0x2ea   :  { %414 = vrot.lane.b32.xlu0 %v412_v32, %s1792_s13  ;;  %v1575_v36 = vpop.eup %1574  ;;  %v1507_v43 = vmul.f32 -1.442695, %v392_v41 }
 0x2eb   :  { %v313_v37 = vadd.f32 1.0, %v1575_v36 }
 0x2ed   :  { %1576 = vrcp.f32 %v313_v37  ;;  %v325_v46 = vand.u32 2147483648, %v313_v37  ;;  %vm319_vm14 = vweird.f32 %v313_v37  ;;  %v323_v47 = vand.u32 2147483647, %v313_v37 }
 0x2ee   :  { %1578 = vpow2.f32 %v1507_v43 }
 0x2ef   :  { %v326_v50 = vor.u32 1.1754944e-38, %v325_v46  ;;  %vm324_vm1 = vcmp.eq.f32.partialorder %v323_v47, 8.507059e+37 }
 0x2f3   :  { %v1577_v38 = vpop.eup %1576 }
 0x2f4   :  { %v315_v40 = vmul.f32 %v1577_v38, %v313_v37  ;;  %vm320_vm13 = vweird.f32 %v1577_v38  ;;  %v1579_v48 = vpop.eup %1578 }
 0x2f5   :  { %vm321_vm15 = vmor %vm319_vm14, %vm320_vm13  ;;  %v396_v51 = vadd.f32 1.0, %v1579_v48  ;;  %vm1511_vm14 = vcmp.gt.s32.totalorder %v1936_v53, 2 }
 0x2f6   :  { %v316_v42 = vsub.f32 1.0, %v315_v40 }
 0x2f7   :  { %1580 = vrcp.f32 %v396_v51  ;;  %v408_v0 = vand.u32 2147483648, %v396_v51  ;;  %vm402_vm3 = vweird.f32 %v396_v51  ;;  %v406_v7 = vand.u32 2147483647, %v396_v51 }
 0x2f8   :  { %v317_v44 = vmul.f32 %v1577_v38, %v316_v42 }
 0x2f9   :  { %v409_v12 = vor.u32 1.1754944e-38, %v408_v0  ;;  %vm407_vm5 = vcmp.eq.f32.partialorder %v406_v7, 8.507059e+37 }
 0x2fa   :  { %v318_v45 = vadd.f32 %v1577_v38, %v317_v44 }
 0x2fc   :  { %v322_v49 = vsel %vm321_vm15, %v1577_v38, %v318_v45 }
 0x2fd   :  { %v327_v52 = vsel %vm324_vm1, %v326_v50, %v322_v49  ;;  %v1581_v58 = vpop.eup %1580  ;;  %v531_v49 = vld [vmem:[#allocation8 + $0x28] sm:$0xff] }
 0x2fe   :  { %v398_v59 = vmul.f32 %v1581_v58, %v396_v51  ;;  %vm403_vm2 = vweird.f32 %v1581_v58  ;;  %v341_v29 = vsub.f32 1.0, %v327_v52  ;;  %v347_v32 = vmul.f32 %v327_v52, %v1957_v11 }
 0x2ff   :  { %vm404_vm4 = vmor %vm402_vm3, %vm403_vm2 }
 0x300   :  { %v399_v60 = vsub.f32 1.0, %v398_v59 }
 0x302   :  { %v400_v61 = vmul.f32 %v1581_v58, %v399_v60  ;;  %v448_v60 = vld [vmem:[#allocation6 + $0x10] sm:$0xff] }
 0x304   :  { %v401_v63 = vadd.f32 %v1581_v58, %v400_v61 }
 0x306   :  { %v405_v9 = vsel %vm404_vm4, %v1581_v58, %v401_v63  ;;  %vm1514_vm4 = vcmp.gt.s32.totalorder %v1936_v53, 5 }
 0x307   :  { %v410_v15 = vsel %vm407_vm5, %v409_v12, %v405_v9 }
 0x308   :  { %v424_v37 = vsub.f32 1.0, %v410_v15  ;;  %v430_v40 = vmul.f32 %v410_v15, %v1963_v26 }
 0x33c   :  { %v332_v56 = vpop.permute.xlu2 %331 }
 0x33d   :  { %v334_v57 = vmul.f32 %v332_v56, %v327_v52 }
 0x33f   :  { %336 = vrot.lane.b32.xlu1 %v334_v57, %s1792_s13 }
 0x35c   :  { %v415_v14 = vpop.permute.xlu0 %414 }
 0x35d   :  { %v417_v17 = vmul.f32 %v415_v14, %v410_v15 }
 0x35f   :  { %419 = vrot.lane.b32.xlu2 %v417_v17, %s1792_s13 }
 0x367   :  { %353 = vperm.xlu2 %1558, %v1985_v19  }
 0x3b1   :  { %v337_v20 = vpop.permute.xlu1 %336 }
 0x3b2   :  { %v339_v21 = vadd.f32 %v337_v20, %v282_v33 }
 0x3b4   :  { %1582 = vtanh.f32 %v339_v21 }
 0x3b9   :  { %v420_v22 = vpop.permute.xlu2 %419 }
 0x3ba   :  { %v1583_v23 = vpop.eup %1582  ;;  %v422_v24 = vadd.f32 %v420_v22, %v365_v39 }
 0x3bb   :  { %343 = vrot.lane.b32.xlu0 %v1583_v23, %s1795_s0 }
 0x3bc   :  { %1584 = vtanh.f32 %v422_v24  ;;  %v2028_v24 = vsel %vm1511_vm14, 1, %v1794_v54 }
 0x3c1   :  { %v354_v31 = vpop.permute.xlu2 %353 }
 0x3c2   :  { %v1585_v28 = vpop.eup %1584  ;;  %vm355_vm8 = vcmp.eq.s32.totalorder %v354_v31, 1 }
 0x3c3   :  { %426 = vrot.lane.b32.xlu1 %v1585_v28, %s1795_s0  ;;  %436 = vperm.xlu0 %1559, %v1991_v27  }
 0x42d   :  { %v344_v30 = vpop.permute.xlu0 %343 }
 0x42e   :  { %v346_v33 = vmul.f32 %v344_v30, %v341_v29 }
 0x430   :  { %v348_v34 = vadd.f32 %v347_v32, %v346_v33 }
 0x432   :  { %v1997_v35 = vsel %vm355_vm8, %v348_v34, %v1957_v11  ;;  %v1999_v36 = vsel %vm355_vm8, %v348_v34, 0.0 }
 0x433   :  { %451 = vrot.lane.b32.xlu1 %v1997_v35, %s1795_s0 }
 0x435   :  { %v427_v38 = vpop.permute.xlu1 %426  ;;  %v437_v39 = vpop.permute.xlu0 %436 }
 0x436   :  { %v429_v41 = vmul.f32 %v427_v38, %v424_v37  ;;  %vm438_vm9 = vcmp.eq.s32.totalorder %v437_v39, 1 }
 0x438   :  { %v431_v42 = vadd.f32 %v430_v40, %v429_v41 }
 0x43a   :  { %v2004_v43 = vsel %vm438_vm9, %v431_v42, 0.0  ;;  %v2007_v44 = vsel %vm438_vm9, %v431_v42, %v1963_v26 }
 0x43b   :  { %534 = vrot.lane.b32.xlu2 %v2007_v44, %s1795_s0 }
 0x495   :  { %v535_v11 = vpop.permute.xlu2 %534 }
 0x496   :  { %1512 = vmatmul.msk.f32.vlgmr.msrb.gmra.mxu1 %vm83_vm0, %v535_v11 }
 0x497   :  { %1214 = vmatpush.msrb.mxu1 %v1858_v3 }
 0x499   :  { %1215 = vmatpush.msrb.mxu1 %v1864_v5 }
 0x49b   :  { %1216 = vmatpush.msrb.mxu1 %v1868_v6 }
 0x49d   :  { %1217 = vmatpush.msrb.mxu1 %v1879_v10 }
 0x4a5   :  { %v452_v45 = vpop.permute.xlu1 %451 }
 0x4a6   :  { %1509 = vmatmul.msk.f32.vlgmr.msrb.gmra.mxu0 %vm83_vm0, %v452_v45 }
 0x4a7   :  { %1131 = vmatpush.msrb.mxu0 %v1853_v1 }
 0x4a9   :  { %1132 = vmatpush.msrb.mxu0 %v1855_v2 }
 0x4ab   :  { %1133 = vmatpush.msrb.mxu0 %v1861_v4 }
 0x4ad   :  { %1134 = vmatpush.msrb.mxu0 %v1874_v8 }
 0x513   :  { %v555_v26 = vpop.f32.mrf.mxu1 }
 0x514   :  { %v578_v46 = vadd.f32 %v555_v26, %v1926_v16  ;;  %v558_v50 = vadd.f32 %v555_v26, %v531_v49 }
 0x516   :  { %580 = vrot.lane.b32.xlu2 %v578_v46, %s1792_s13  ;;  %v1513_v51 = vmul.f32 -1.442695, %v558_v50 }
 0x518   :  { %1586 = vpow2.f32 %v1513_v51 }
 0x51e   :  { %v1587_v52 = vpop.eup %1586 }
 0x51f   :  { %v562_v56 = vadd.f32 1.0, %v1587_v52 }
 0x521   :  { %1588 = vrcp.f32 %v562_v56  ;;  %v574_v7 = vand.u32 2147483648, %v562_v56  ;;  %vm568_vm11 = vweird.f32 %v562_v56  ;;  %v572_v12 = vand.u32 2147483647, %v562_v56 }
 0x523   :  { %v472_v47 = vpop.f32.mrf.mxu0  ;;  %v575_v15 = vor.u32 1.1754944e-38, %v574_v7  ;;  %vm573_vm13 = vcmp.eq.f32.partialorder %v572_v12, 8.507059e+37 }
 0x524   :  { %v495_v48 = vadd.f32 %v472_v47, %v1922_v13  ;;  %v475_v63 = vadd.f32 %v472_v47, %v448_v60 }
 0x526   :  { %497 = vrot.lane.b32.xlu1 %v495_v48, %s1792_s13  ;;  %v1510_v9 = vmul.f32 -1.442695, %v475_v63  ;;  %v2036_v48 = vsel %vm1514_vm4, 1, %v1794_v54 }
 0x527   :  { %v1589_v57 = vpop.eup %1588 }
 0x528   :  { %v564_v58 = vmul.f32 %v1589_v57, %v562_v56  ;;  %vm569_vm10 = vweird.f32 %v1589_v57  ;;  %1590 = vpow2.f32 %v1510_v9 }
 0x529   :  { %vm570_vm12 = vmor %vm568_vm11, %vm569_vm10 }
 0x52a   :  { %v565_v59 = vsub.f32 1.0, %v564_v58 }
 0x52c   :  { %v566_v61 = vmul.f32 %v1589_v57, %v565_v59 }
 0x52e   :  { %v567_v0 = vadd.f32 %v1589_v57, %v566_v61  ;;  %v1591_v22 = vpop.eup %1590 }
 0x52f   :  { %v479_v23 = vadd.f32 1.0, %v1591_v22 }
 0x530   :  { %v571_v14 = vsel %vm570_vm12, %v1589_v57, %v567_v0 }
 0x531   :  { %v576_v20 = vsel %vm573_vm13, %v575_v15, %v571_v14  ;;  %1592 = vrcp.f32 %v479_v23  ;;  %v491_v33 = vand.u32 2147483648, %v479_v23  ;;  %vm485_vm1 = vweird.f32 %v479_v23 }
 0x532   :  { %v489_v34 = vand.u32 2147483647, %v479_v23  ;;  %v590_v58 = vsub.f32 1.0, %v576_v20  ;;  %v596_v0 = vmul.f32 %v576_v20, %v2007_v44 }
 0x533   :  { %v492_v38 = vor.u32 1.1754944e-38, %v491_v33 }
 0x534   :  { %vm490_vm3 = vcmp.eq.f32.partialorder %v489_v34, 8.507059e+37 }
 0x537   :  { %v1593_v28 = vpop.eup %1592 }
 0x538   :  { %v481_v29 = vmul.f32 %v1593_v28, %v479_v23  ;;  %vm486_vm15 = vweird.f32 %v1593_v28 }
 0x539   :  { %vm487_vm2 = vmor %vm485_vm1, %vm486_vm15  ;;  %vm1517_vm15 = vcmp.gt.s32.totalorder %v1936_v53, 3  ;;  %vm1520_vm1 = vcmp.gt.s32.totalorder %v1936_v53, 4 }
 0x53a   :  { %v482_v30 = vsub.f32 1.0, %v481_v29 }
 0x53c   :  { %v483_v31 = vmul.f32 %v1593_v28, %v482_v30 }
 0x53e   :  { %v484_v32 = vadd.f32 %v1593_v28, %v483_v31 }
 0x540   :  { %v488_v37 = vsel %vm487_vm2, %v1593_v28, %v484_v32 }
 0x541   :  { %v493_v40 = vsel %vm490_vm3, %v492_v38, %v488_v37 }
 0x542   :  { %v507_v50 = vsub.f32 1.0, %v493_v40  ;;  %v513_v56 = vmul.f32 %v493_v40, %v1997_v35 }
 0x570   :  { %v581_v17 = vpop.permute.xlu2 %580 }
 0x571   :  { %v583_v21 = vmul.f32 %v581_v17, %v576_v20 }
 0x573   :  { %585 = vrot.lane.b32.xlu1 %v583_v21, %s1792_s13 }
 0x57b   :  { %519 = vperm.xlu1 %1557, %v2028_v24  }
 0x598   :  { %v498_v39 = vpop.permute.xlu1 %497 }
 0x599   :  { %v500_v41 = vmul.f32 %v498_v39, %v493_v40 }
 0x59b   :  { %502 = vrot.lane.b32.xlu0 %v500_v41, %s1792_s13 }
 0x5e5   :  { %v586_v42 = vpop.permute.xlu1 %585 }
 0x5e6   :  { %v588_v11 = vadd.f32 %v586_v42, %v531_v49 }
 0x5e8   :  { %1594 = vtanh.f32 %v588_v11 }
 0x5ed   :  { %v520_v49 = vpop.permute.xlu1 %519 }
 0x5ee   :  { %v1595_v45 = vpop.eup %1594  ;;  %vm521_vm5 = vcmp.eq.s32.totalorder %v520_v49, 1 }
 0x5ef   :  { %592 = vrot.lane.b32.xlu0 %v1595_v45, %s1795_s0 }
 0x60d   :  { %v503_v26 = vpop.permute.xlu0 %502 }
 0x60e   :  { %v505_v46 = vadd.f32 %v503_v26, %v448_v60 }
 0x610   :  { %1596 = vtanh.f32 %v505_v46 }
 0x616   :  { %v1597_v47 = vpop.eup %1596 }
 0x617   :  { %509 = vrot.lane.b32.xlu2 %v1597_v47, %s1795_s0 }
 0x61f   :  { %602 = vperm.xlu2 %1558, %v2036_v48  }
 0x661   :  { %v593_v52 = vpop.permute.xlu0 %592 }
 0x662   :  { %v595_v60 = vmul.f32 %v593_v52, %v590_v58  ;;  %v2073_v58 = vsel %vm1517_vm15, 1, %v1794_v54 }
 0x664   :  { %v597_v7 = vadd.f32 %v596_v0, %v595_v60 }
 0x671   :  { %v510_v51 = vpop.permute.xlu2 %509 }
 0x672   :  { %v512_v57 = vmul.f32 %v510_v51, %v507_v50 }
 0x674   :  { %v514_v59 = vadd.f32 %v513_v56, %v512_v57 }
 0x676   :  { %v2041_v61 = vsel %vm521_vm5, %v514_v59, %v1997_v35  ;;  %v2043_v63 = vsel %vm521_vm5, %v514_v59, 0.0 }
 0x677   :  { %617 = vrot.lane.b32.xlu0 %v2041_v61, %s1795_s0 }
 0x679   :  { %v603_v9 = vpop.permute.xlu2 %602 }
 0x67a   :  { %vm604_vm6 = vcmp.eq.s32.totalorder %v603_v9, 1 }
 0x67b   :  { %v2048_v12 = vsel %vm604_vm6, %v597_v7, 0.0  ;;  %v2051_v14 = vsel %vm604_vm6, %v597_v7, %v2007_v44 }
 0x67c   :  { %700 = vrot.lane.b32.xlu1 %v2051_v14, %s1795_s0 }
 0x6e9   :  { %v618_v35 = vpop.permute.xlu0 %617 }
 0x6ea   :  { %1515 = vmatmul.msk.f32.vlgmr.msrb.gmra.mxu2 %vm83_vm0, %v618_v35 }
 0x6eb   :  { %1297 = vmatpush.msrb.mxu2 %v1853_v1 }
 0x6ed   :  { %1298 = vmatpush.msrb.mxu2 %v1855_v2 }
 0x6ee   :  { %v701_v15 = vpop.permute.xlu1 %700 }
 0x6ef   :  { %1518 = vmatmul.msk.f32.vlgmr.msrb.gmra.mxu3 %vm83_vm0, %v701_v15  ;;  %1299 = vmatpush.msrb.mxu2 %v1861_v4  ;;  %v614_v4 = vld [vmem:[#allocation6 + $0x18] sm:$0xff]  ;;  %v2080_v15 = vsel %vm1520_vm1, 1, %v1794_v54 }
 0x6f0   :  { %1378 = vmatpush.msrb.mxu3 %v1858_v3 }
 0x6f1   :  { %1300 = vmatpush.msrb.mxu2 %v1874_v8 }
 0x6f2   :  { %1379 = vmatpush.msrb.mxu3 %v1864_v5 }
 0x6f4   :  { %1380 = vmatpush.msrb.mxu3 %v1868_v6  ;;  %v697_v6 = vld [vmem:[#allocation8 + $0x20] sm:$0xff] }
 0x6f6   :  { %1381 = vmatpush.msrb.mxu3 %v1879_v10 }
 0x76d   :  { %v638_v44 = vpop.f32.mrf.mxu2 }
 0x76e   :  { %v661_v1 = vadd.f32 %v638_v44, %v1922_v13  ;;  %v641_v3 = vadd.f32 %v638_v44, %v614_v4 }
 0x770   :  { %663 = vrot.lane.b32.xlu2 %v661_v1, %s1792_s13  ;;  %v1516_v20 = vmul.f32 -1.442695, %v641_v3 }
 0x772   :  { %v721_v2 = vpop.f32.mrf.mxu3  ;;  %1598 = vpow2.f32 %v1516_v20 }
 0x773   :  { %v744_v17 = vadd.f32 %v721_v2, %v1926_v16  ;;  %v724_v10 = vadd.f32 %v721_v2, %v697_v6 }
 0x775   :  { %746 = vrot.lane.b32.xlu0 %v744_v17, %s1792_s13  ;;  %v1519_v23 = vmul.f32 -1.442695, %v724_v10 }
 0x778   :  { %v1599_v8 = vpop.eup %1598 }
 0x779   :  { %v645_v5 = vadd.f32 1.0, %v1599_v8 }
 0x77b   :  { %1600 = vrcp.f32 %v645_v5  ;;  %v657_v32 = vand.u32 2147483648, %v645_v5  ;;  %vm651_vm8 = vweird.f32 %v645_v5  ;;  %v655_v33 = vand.u32 2147483647, %v645_v5 }
 0x77c   :  { %1602 = vpow2.f32 %v1519_v23 }
 0x77d   :  { %v658_v38 = vor.u32 1.1754944e-38, %v657_v32  ;;  %vm656_vm10 = vcmp.eq.f32.partialorder %v655_v33, 8.507059e+37 }
 0x781   :  { %v1601_v21 = vpop.eup %1600 }
 0x782   :  { %v647_v22 = vmul.f32 %v1601_v21, %v645_v5  ;;  %vm652_vm7 = vweird.f32 %v1601_v21  ;;  %v1603_v31 = vpop.eup %1602 }
 0x783   :  { %vm653_vm9 = vmor %vm651_vm8, %vm652_vm7  ;;  %v728_v34 = vadd.f32 1.0, %v1603_v31 }
 0x784   :  { %v648_v28 = vsub.f32 1.0, %v647_v22 }
 0x785   :  { %1604 = vrcp.f32 %v728_v34  ;;  %v740_v47 = vand.u32 2147483648, %v728_v34  ;;  %vm734_vm12 = vweird.f32 %v728_v34  ;;  %v738_v50 = vand.u32 2147483647, %v728_v34 }
 0x786   :  { %v649_v29 = vmul.f32 %v1601_v21, %v648_v28 }
 0x787   :  { %v741_v49 = vor.u32 1.1754944e-38, %v740_v47  ;;  %vm739_vm14 = vcmp.eq.f32.partialorder %v738_v50, 8.507059e+37 }
 0x788   :  { %v650_v30 = vadd.f32 %v1601_v21, %v649_v29 }
 0x78a   :  { %v654_v37 = vsel %vm653_vm9, %v1601_v21, %v650_v30 }
 0x78b   :  { %v659_v40 = vsel %vm656_vm10, %v658_v38, %v654_v37  ;;  %v1605_v42 = vpop.eup %1604  ;;  %v780_v38 = vld [vmem:[#allocation6 + $0x20] sm:$0xff] }
 0x78c   :  { %v730_v11 = vmul.f32 %v1605_v42, %v728_v34  ;;  %vm735_vm11 = vweird.f32 %v1605_v42  ;;  %v673_v44 = vsub.f32 1.0, %v659_v40  ;;  %v679_v17 = vmul.f32 %v659_v40, %v2041_v61 }
 0x78d   :  { %vm736_vm13 = vmor %vm734_vm12, %vm735_vm11 }
 0x78e   :  { %v731_v45 = vsub.f32 1.0, %v730_v11 }
 0x790   :  { %v732_v26 = vmul.f32 %v1605_v42, %v731_v45 }
 0x792   :  { %v733_v46 = vadd.f32 %v1605_v42, %v732_v26 }
 0x794   :  { %v737_v51 = vsel %vm736_vm13, %v1605_v42, %v733_v46 }
 0x795   :  { %v742_v56 = vsel %vm739_vm14, %v741_v49, %v737_v51 }
 0x796   :  { %v756_v20 = vsub.f32 1.0, %v742_v56  ;;  %v762_v54 = vmul.f32 %v742_v56, %v2051_v14 }
 0x7ca   :  { %v664_v39 = vpop.permute.xlu2 %663 }
 0x7cb   :  { %v666_v41 = vmul.f32 %v664_v39, %v659_v40 }
 0x7cd   :  { %668 = vrot.lane.b32.xlu1 %v666_v41, %s1792_s13 }
 0x7e7   :  { %v747_v52 = vpop.permute.xlu0 %746 }
 0x7e8   :  { %v749_v57 = vmul.f32 %v747_v52, %v742_v56 }
 0x7ea   :  { %751 = vrot.lane.b32.xlu2 %v749_v57, %s1792_s13 }
 0x7f2   :  { %685 = vperm.xlu2 %1558, %v2073_v58  }
 0x83f   :  { %v669_v59 = vpop.permute.xlu1 %668 }
 0x840   :  { %v671_v60 = vadd.f32 %v669_v59, %v614_v4 }
 0x842   :  { %1606 = vtanh.f32 %v671_v60 }
 0x844   :  { %v752_v0 = vpop.permute.xlu2 %751 }
 0x845   :  { %v754_v7 = vadd.f32 %v752_v0, %v697_v6 }
 0x847   :  { %1608 = vtanh.f32 %v754_v7 }
 0x848   :  { %v1607_v9 = vpop.eup %1606 }
 0x849   :  { %675 = vrot.lane.b32.xlu0 %v1607_v9, %s1795_s0 }
 0x84c   :  { %v686_v2 = vpop.permute.xlu2 %685 }
 0x84d   :  { %v1609_v35 = vpop.eup %1608  ;;  %vm687_vm2 = vcmp.eq.s32.totalorder %v686_v2, 1 }
 0x84e   :  { %758 = vrot.lane.b32.xlu1 %v1609_v35, %s1795_s0 }
 0x851   :  { %768 = vperm.xlu0 %1559, %v2080_v15  }
 0x8bb   :  { %v676_v1 = vpop.permute.xlu0 %675 }
 0x8bc   :  { %v678_v4 = vmul.f32 %v676_v1, %v673_v44 }
 0x8be   :  { %v680_v3 = vadd.f32 %v679_v17, %v678_v4 }
 0x8c0   :  { %v759_v8 = vpop.permute.xlu1 %758  ;;  %v2085_v53 = vsel %vm687_vm2, %v680_v3, %v2041_v61  ;;  %v2087_v5 = vsel %vm687_vm2, %v680_v3, 0.0 }
 0x8c1   :  { %v761_v6 = vmul.f32 %v759_v8, %v756_v20  ;;  %783 = vrot.lane.b32.xlu1 %v2085_v53, %s1795_s0 }
 0x8c3   :  { %v763_v21 = vadd.f32 %v762_v54, %v761_v6  ;;  %v769_v10 = vpop.permute.xlu0 %768 }
 0x8c4   :  { %vm770_vm3 = vcmp.eq.s32.totalorder %v769_v10, 1 }
 0x8c5   :  { %v2092_v22 = vsel %vm770_vm3, %v763_v21, 0.0  ;;  %v2095_v23 = vsel %vm770_vm3, %v763_v21, %v2051_v14  ;;  %v863_v14 = vld [vmem:[#allocation8 + $0x18] sm:$0xff] }
 0x8c6   :  { %866 = vrot.lane.b32.xlu2 %v2095_v23, %s1795_s0 }
 0x920   :  { %v867_v61 = vpop.permute.xlu2 %866 }
 0x921   :  { %1524 = vmatmul.msk.f32.vlgmr.msra.gmra.mxu1 %vm83_vm0, %v867_v61 }
 0x933   :  { %v784_v28 = vpop.permute.xlu1 %783 }
 0x934   :  { %1521 = vmatmul.msk.f32.vlgmr.msra.gmra.mxu0 %vm83_vm0, %v784_v28 }
 0x99e   :  { %v887_v29 = vpop.f32.mrf.mxu1 }
 0x99f   :  { %v910_v30 = vadd.f32 %v887_v29, %v1926_v16  ;;  %v890_v33 = vadd.f32 %v887_v29, %v863_v14 }
 0x9a1   :  { %912 = vrot.lane.b32.xlu1 %v910_v30, %s1792_s13  ;;  %v1525_v34 = vmul.f32 -1.442695, %v890_v33 }
 0x9a3   :  { %1610 = vpow2.f32 %v1525_v34 }
 0x9a9   :  { %v1611_v37 = vpop.eup %1610 }
 0x9aa   :  { %v894_v39 = vadd.f32 1.0, %v1611_v37 }
 0x9ac   :  { %1612 = vrcp.f32 %v894_v39  ;;  %v906_v51 = vand.u32 2147483648, %v894_v39  ;;  %vm900_vm5 = vweird.f32 %v894_v39  ;;  %v904_v49 = vand.u32 2147483647, %v894_v39 }
 0x9ae   :  { %v907_v57 = vor.u32 1.1754944e-38, %v906_v51  ;;  %vm905_vm7 = vcmp.eq.f32.partialorder %v904_v49, 8.507059e+37  ;;  %v1029_v49 = vld [vmem:[#allocation8 + $0x10] sm:$0xff] }
 0x9b1   :  { %v804_v31 = vpop.f32.mrf.mxu0 }
 0x9b2   :  { %v827_v32 = vadd.f32 %v804_v31, %v1922_v13  ;;  %v807_v40 = vadd.f32 %v804_v31, %v780_v38  ;;  %v1613_v42 = vpop.eup %1612 }
 0x9b3   :  { %v896_v11 = vmul.f32 %v1613_v42, %v894_v39  ;;  %vm901_vm4 = vweird.f32 %v1613_v42 }
 0x9b4   :  { %829 = vrot.lane.b32.xlu0 %v827_v32, %s1792_s13  ;;  %v1522_v41 = vmul.f32 -1.442695, %v807_v40  ;;  %vm902_vm6 = vmor %vm900_vm5, %vm901_vm4 }
 0x9b5   :  { %v897_v26 = vsub.f32 1.0, %v896_v11 }
 0x9b6   :  { %1614 = vpow2.f32 %v1522_v41 }
 0x9b7   :  { %v898_v47 = vmul.f32 %v1613_v42, %v897_v26 }
 0x9b9   :  { %v899_v50 = vadd.f32 %v1613_v42, %v898_v47 }
 0x9bb   :  { %v903_v56 = vsel %vm902_vm6, %v1613_v42, %v899_v50 }
 0x9bc   :  { %v1615_v45 = vpop.eup %1614  ;;  %v908_v59 = vsel %vm905_vm7, %v907_v57, %v903_v56 }
 0x9bd   :  { %v811_v46 = vadd.f32 1.0, %v1615_v45  ;;  %v922_v34 = vsub.f32 1.0, %v908_v59  ;;  %v928_v40 = vmul.f32 %v908_v59, %v2095_v23 }
 0x9bf   :  { %1616 = vrcp.f32 %v811_v46  ;;  %v823_v1 = vand.u32 2147483648, %v811_v46  ;;  %vm817_vm9 = vweird.f32 %v811_v46  ;;  %v821_v2 = vand.u32 2147483647, %v811_v46 }
 0x9c1   :  { %v824_v4 = vor.u32 1.1754944e-38, %v823_v1  ;;  %vm822_vm11 = vcmp.eq.f32.partialorder %v821_v2, 8.507059e+37 }
 0x9c5   :  { %v1617_v52 = vpop.eup %1616 }
 0x9c6   :  { %v813_v0 = vmul.f32 %v1617_v52, %v811_v46  ;;  %vm818_vm8 = vweird.f32 %v1617_v52 }
 0x9c7   :  { %vm819_vm10 = vmor %vm817_vm9, %vm818_vm8 }
 0x9c8   :  { %v814_v9 = vsub.f32 1.0, %v813_v0 }
 0x9ca   :  { %v815_v35 = vmul.f32 %v1617_v52, %v814_v9 }
 0x9cc   :  { %v816_v44 = vadd.f32 %v1617_v52, %v815_v35 }
 0x9ce   :  { %v820_v17 = vsel %vm819_vm10, %v1617_v52, %v816_v44 }
 0x9cf   :  { %v825_v20 = vsel %vm822_vm11, %v824_v4, %v820_v17 }
 0x9d0   :  { %v839_v28 = vsub.f32 1.0, %v825_v20  ;;  %v845_v32 = vmul.f32 %v825_v20, %v2085_v53 }
 0xa13   :  { %v913_v60 = vpop.permute.xlu1 %912 }
 0xa14   :  { %v915_v7 = vmul.f32 %v913_v60, %v908_v59 }
 0xa16   :  { %917 = vrot.lane.b32.xlu0 %v915_v7, %s1792_s13 }
 0xa1e   :  { %851 = vperm.xlu0 %1559, %v2080_v15  }
 0xa26   :  { %v830_v3 = vpop.permute.xlu0 %829 }
 0xa27   :  { %v832_v8 = vmul.f32 %v830_v3, %v825_v20 }
 0xa29   :  { %834 = vrot.lane.b32.xlu2 %v832_v8, %s1792_s13 }
 0xa83   :  { %v835_v54 = vpop.permute.xlu2 %834 }
 0xa84   :  { %v837_v6 = vadd.f32 %v835_v54, %v780_v38 }
 0xa86   :  { %1618 = vtanh.f32 %v837_v6 }
 0xa88   :  { %v918_v21 = vpop.permute.xlu0 %917 }
 0xa89   :  { %v920_v10 = vadd.f32 %v918_v21, %v863_v14 }
 0xa8b   :  { %1620 = vtanh.f32 %v920_v10 }
 0xa8c   :  { %v1619_v15 = vpop.eup %1618 }
 0xa8d   :  { %841 = vrot.lane.b32.xlu1 %v1619_v15, %s1795_s0 }
 0xa90   :  { %v852_v30 = vpop.permute.xlu0 %851 }
 0xa91   :  { %v1621_v61 = vpop.eup %1620  ;;  %vm853_vm12 = vcmp.eq.s32.totalorder %v852_v30, 1 }
 0xa92   :  { %924 = vrot.lane.b32.xlu2 %v1621_v61, %s1795_s0 }
 0xa95   :  { %934 = vperm.xlu1 %1557, %v2073_v58  }
 0xaec   :  { %v925_v31 = vpop.permute.xlu2 %924 }
 0xaed   :  { %v927_v14 = vmul.f32 %v925_v31, %v922_v34 }
 0xaef   :  { %v929_v58 = vadd.f32 %v928_v40, %v927_v14 }
 0xaff   :  { %v842_v29 = vpop.permute.xlu1 %841 }
 0xb00   :  { %v844_v33 = vmul.f32 %v842_v29, %v839_v28 }
 0xb02   :  { %v846_v37 = vadd.f32 %v845_v32, %v844_v33 }
 0xb04   :  { %v2113_v38 = vsel %vm853_vm12, %v846_v37, %v2085_v53  ;;  %v2115_v39 = vsel %vm853_vm12, %v846_v37, 0.0 }
 0xb05   :  { %949 = vrot.lane.b32.xlu2 %v2113_v38, %s1795_s0 }
 0xb07   :  { %v935_v41 = vpop.permute.xlu1 %934 }
 0xb08   :  { %vm936_vm13 = vcmp.eq.s32.totalorder %v935_v41, 1 }
 0xb09   :  { %v2120_v42 = vsel %vm936_vm13, %v929_v58, 0.0  ;;  %v2123_v11 = vsel %vm936_vm13, %v929_v58, %v2095_v23  ;;  %v946_v23 = vld [vmem:[#allocation6 + $0x28] sm:$0xff] }
 0xb0a   :  { %1032 = vrot.lane.b32.xlu0 %v2123_v11, %s1795_s0 }
 0xb5f   :  { %v950_v53 = vpop.permute.xlu2 %949 }
 0xb60   :  { %1527 = vmatmul.msk.f32.vlgmr.msra.gmra.mxu2 %vm83_vm0, %v950_v53 }
 0xb7c   :  { %v1033_v45 = vpop.permute.xlu0 %1032 }
 0xb7d   :  { %1530 = vmatmul.msk.f32.vlgmr.msra.gmra.mxu3 %vm83_vm0, %v1033_v45 }
 0xbe3   :  { %v970_v26 = vpop.f32.mrf.mxu2 }
 0xbe4   :  { %v993_v46 = vadd.f32 %v970_v26, %v1922_v13  ;;  %v973_v51 = vadd.f32 %v970_v26, %v946_v23 }
 0xbe6   :  { %995 = vrot.lane.b32.xlu1 %v993_v46, %s1792_s13  ;;  %v1528_v52 = vmul.f32 -1.442695, %v973_v51 }
 0xbe8   :  { %1622 = vpow2.f32 %v1528_v52 }
 0xbee   :  { %v1623_v59 = vpop.eup %1622 }
 0xbef   :  { %v977_v60 = vadd.f32 1.0, %v1623_v59 }
 0xbf1   :  { %v989_v20 = vand.u32 2147483648, %v977_v60  ;;  %vm983_vm15 = vweird.f32 %v977_v60  ;;  %v987_v54 = vand.u32 2147483647, %v977_v60 }
 0xbf3   :  { %v990_v21 = vor.u32 1.1754944e-38, %v989_v20  ;;  %vm988_vm3 = vcmp.eq.f32.partialorder %v987_v54, 8.507059e+37 }
 0xc00   :  { %v1053_v47 = vpop.f32.mrf.mxu3 }
 0xc01   :  { %v1076_v50 = vadd.f32 %v1053_v47, %v1926_v16  ;;  %v1056_v56 = vadd.f32 %v1053_v47, %v1029_v49 }
 0xc03   :  { %1078 = vrot.lane.b32.xlu2 %v1076_v50, %s1792_s13  ;;  %v1531_v57 = vmul.f32 -1.442695, %v1056_v56 }
 0xc05   :  { %1624 = vpow2.f32 %v1531_v57 }
 0xc06   :  { %1626 = vrcp.f32 %v977_v60 }
 0xc0b   :  { %v1625_v0 = vpop.eup %1624 }
 0xc0c   :  { %v1060_v7 = vadd.f32 1.0, %v1625_v0  ;;  %v1627_v9 = vpop.eup %1626 }
 0xc0d   :  { %v979_v35 = vmul.f32 %v1627_v9, %v977_v60  ;;  %vm984_vm14 = vweird.f32 %v1627_v9 }
 0xc0e   :  { %1628 = vrcp.f32 %v1060_v7  ;;  %vm985_vm1 = vmor %vm983_vm15, %vm984_vm14  ;;  %v1072_v15 = vand.u32 2147483648, %v1060_v7  ;;  %vm1066_vm4 = vweird.f32 %v1060_v7  ;;  %v1070_v29 = vand.u32 2147483647, %v1060_v7 }
 0xc0f   :  { %v980_v1 = vsub.f32 1.0, %v979_v35 }
 0xc10   :  { %v1073_v32 = vor.u32 1.1754944e-38, %v1072_v15  ;;  %vm1071_vm6 = vcmp.eq.f32.partialorder %v1070_v29, 8.507059e+37 }
 0xc11   :  { %v981_v17 = vmul.f32 %v1627_v9, %v980_v1 }
 0xc13   :  { %v982_v3 = vadd.f32 %v1627_v9, %v981_v17 }
 0xc14   :  { %v1629_v44 = vpop.eup %1628 }
 0xc15   :  { %v1062_v2 = vmul.f32 %v1629_v44, %v1060_v7  ;;  %v986_v6 = vsel %vm985_vm1, %v1627_v9, %v982_v3  ;;  %vm1067_vm2 = vweird.f32 %v1629_v44 }
 0xc16   :  { %v991_v61 = vsel %vm988_vm3, %v990_v21, %v986_v6  ;;  %vm1068_vm5 = vmor %vm1066_vm4, %vm1067_vm2 }
 0xc17   :  { %v1063_v4 = vsub.f32 1.0, %v1062_v2  ;;  %v1005_v26 = vsub.f32 1.0, %v991_v61  ;;  %v1011_v50 = vmul.f32 %v991_v61, %v2113_v38  ;;  %v1112_v2 = vld [vmem:[#allocation6 + $0x30] sm:$0xff] }
 0xc19   :  { %v1064_v8 = vmul.f32 %v1629_v44, %v1063_v4 }
 0xc1b   :  { %v1065_v10 = vadd.f32 %v1629_v44, %v1064_v8 }
 0xc1d   :  { %v1069_v31 = vsel %vm1068_vm5, %v1629_v44, %v1065_v10 }
 0xc1e   :  { %v1074_v34 = vsel %vm1071_vm6, %v1073_v32, %v1069_v31  ;;  %v1195_v32 = vld [vmem:[#allocation8 + $0x8] sm:$0xff] }
 0xc1f   :  { %v1088_v52 = vsub.f32 1.0, %v1074_v34 }
 0xc58   :  { %v996_v28 = vpop.permute.xlu1 %995 }
 0xc59   :  { %v998_v30 = vmul.f32 %v996_v28, %v991_v61 }
 0xc5b   :  { %1000 = vrot.lane.b32.xlu0 %v998_v30, %s1792_s13 }
 0xc5d   :  { %v1079_v33 = vpop.permute.xlu2 %1078 }
 0xc5e   :  { %v1081_v37 = vmul.f32 %v1079_v33, %v1074_v34 }
 0xc60   :  { %1083 = vrot.lane.b32.xlu1 %v1081_v37, %s1792_s13 }
 0xc68   :  { %1017 = vperm.xlu1 %1557, %v2036_v48  }
 0xccd   :  { %v1001_v14 = vpop.permute.xlu0 %1000 }
 0xcce   :  { %v1003_v40 = vadd.f32 %v1001_v14, %v946_v23 }
 0xcd0   :  { %1630 = vtanh.f32 %v1003_v40 }
 0xcd2   :  { %v1084_v58 = vpop.permute.xlu1 %1083 }
 0xcd3   :  { %v1086_v41 = vadd.f32 %v1084_v58, %v1029_v49 }
 0xcd5   :  { %1632 = vtanh.f32 %v1086_v41 }
 0xcd6   :  { %v1631_v53 = vpop.eup %1630 }
 0xcd7   :  { %1007 = vrot.lane.b32.xlu2 %v1631_v53, %s1795_s0 }
 0xcda   :  { %v1018_v47 = vpop.permute.xlu1 %1017 }
 0xcdb   :  { %v1633_v45 = vpop.eup %1632  ;;  %vm1019_vm7 = vcmp.eq.s32.totalorder %v1018_v47, 1 }
 0xcdc   :  { %1090 = vrot.lane.b32.xlu0 %v1633_v45, %s1795_s0 }
 0xcdf   :  { %1100 = vperm.xlu2 %1558, %v2028_v24   ;;  %v1094_v24 = vmul.f32 %v1074_v34, %v2123_v11 }
 0xd31   :  { %v1008_v46 = vpop.permute.xlu2 %1007 }
 0xd32   :  { %v1010_v48 = vmul.f32 %v1008_v46, %v1005_v26 }
 0xd34   :  { %v1012_v51 = vadd.f32 %v1011_v50, %v1010_v48 }
 0xd36   :  { %v2141_v23 = vsel %vm1019_vm7, %v1012_v51, %v2113_v38  ;;  %v2143_v49 = vsel %vm1019_vm7, %v1012_v51, 0.0 }
 0xd37   :  { %1115 = vrot.lane.b32.xlu0 %v2141_v23, %s1795_s0 }
 0xd39   :  { %v1101_v57 = vpop.permute.xlu2 %1100 }
 0xd3a   :  { %vm1102_vm8 = vcmp.eq.s32.totalorder %v1101_v57, 1 }
 0xd4e   :  { %v1091_v56 = vpop.permute.xlu0 %1090 }
 0xd4f   :  { %v1093_v59 = vmul.f32 %v1091_v56, %v1088_v52 }
 0xd51   :  { %v1095_v60 = vadd.f32 %v1094_v24, %v1093_v59 }
 0xd53   :  { %v2149_v0 = vsel %vm1102_vm8, %v1095_v60, %v2123_v11  ;;  %v2151_v7 = vsel %vm1102_vm8, %v1095_v60, 0.0 }
 0xd54   :  { %1198 = vrot.lane.b32.xlu1 %v2149_v0, %s1795_s0 }
 0xda9   :  { %v1116_v38 = vpop.permute.xlu0 %1115 }
 0xdaa   :  { %1533 = vmatmul.msk.f32.vlgmr.msrb.gmra.mxu0 %vm83_vm0, %v1116_v38 }
 0xdc6   :  { %v1199_v9 = vpop.permute.xlu1 %1198 }
 0xdc7   :  { %1536 = vmatmul.msk.f32.vlgmr.msrb.gmra.mxu1 %vm83_vm0, %v1199_v9 }
 0xe27   :  { %v1136_v35 = vpop.f32.mrf.mxu0 }
 0xe28   :  { %v1159_v44 = vadd.f32 %v1136_v35, %v1922_v13  ;;  %v1139_v17 = vadd.f32 %v1136_v35, %v1112_v2 }
 0xe2a   :  { %1161 = vrot.lane.b32.xlu2 %v1159_v44, %s1792_s13  ;;  %v1534_v4 = vmul.f32 -1.442695, %v1139_v17 }
 0xe2c   :  { %1634 = vpow2.f32 %v1534_v4 }
 0xe32   :  { %v1635_v3 = vpop.eup %1634 }
 0xe33   :  { %v1143_v20 = vadd.f32 1.0, %v1635_v3 }
 0xe35   :  { %1636 = vrcp.f32 %v1143_v20  ;;  %v1155_v15 = vand.u32 2147483648, %v1143_v20  ;;  %vm1149_vm10 = vweird.f32 %v1143_v20  ;;  %v1153_v61 = vand.u32 2147483647, %v1143_v20 }
 0xe37   :  { %v1156_v29 = vor.u32 1.1754944e-38, %v1155_v15  ;;  %vm1154_vm12 = vcmp.eq.f32.partialorder %v1153_v61, 8.507059e+37 }
 0xe3b   :  { %v1637_v8 = vpop.eup %1636 }
 0xe3c   :  { %v1145_v54 = vmul.f32 %v1637_v8, %v1143_v20  ;;  %vm1150_vm9 = vweird.f32 %v1637_v8 }
 0xe3d   :  { %vm1151_vm11 = vmor %vm1149_vm10, %vm1150_vm9 }
 0xe3e   :  { %v1146_v6 = vsub.f32 1.0, %v1145_v54 }
 0xe40   :  { %v1147_v21 = vmul.f32 %v1637_v8, %v1146_v6 }
 0xe42   :  { %v1148_v10 = vadd.f32 %v1637_v8, %v1147_v21 }
 0xe44   :  { %v1219_v1 = vpop.f32.mrf.mxu1  ;;  %v1152_v28 = vsel %vm1151_vm11, %v1637_v8, %v1148_v10 }
 0xe45   :  { %v1242_v11 = vadd.f32 %v1219_v1, %v1926_v16  ;;  %v1157_v31 = vsel %vm1154_vm12, %v1156_v29, %v1152_v28  ;;  %v1222_v34 = vadd.f32 %v1219_v1, %v1195_v32 }
 0xe46   :  { %v1171_v35 = vsub.f32 1.0, %v1157_v31 }
 0xe47   :  { %1244 = vrot.lane.b32.xlu0 %v1242_v11, %s1792_s13  ;;  %v1537_v37 = vmul.f32 -1.442695, %v1222_v34  ;;  %v1177_v11 = vmul.f32 %v1157_v31, %v2141_v23 }
 0xe49   :  { %1638 = vpow2.f32 %v1537_v37 }
 0xe4f   :  { %v1639_v14 = vpop.eup %1638 }
 0xe50   :  { %v1226_v40 = vadd.f32 1.0, %v1639_v14 }
 0xe52   :  { %1640 = vrcp.f32 %v1226_v40  ;;  %v1238_v46 = vand.u32 2147483648, %v1226_v40  ;;  %vm1232_vm14 = vweird.f32 %v1226_v40  ;;  %v1236_v47 = vand.u32 2147483647, %v1226_v40 }
 0xe54   :  { %v1239_v48 = vor.u32 1.1754944e-38, %v1238_v46  ;;  %vm1237_vm1 = vcmp.eq.f32.partialorder %v1236_v47, 8.507059e+37 }
 0xe58   :  { %v1641_v58 = vpop.eup %1640 }
 0xe59   :  { %v1228_v41 = vmul.f32 %v1641_v58, %v1226_v40  ;;  %vm1233_vm13 = vweird.f32 %v1641_v58 }
 0xe5a   :  { %vm1234_vm15 = vmor %vm1232_vm14, %vm1233_vm13 }
 0xe5b   :  { %v1229_v53 = vsub.f32 1.0, %v1228_v41 }
 0xe5d   :  { %v1230_v45 = vmul.f32 %v1641_v58, %v1229_v53 }
 0xe5f   :  { %v1231_v26 = vadd.f32 %v1641_v58, %v1230_v45 }
 0xe61   :  { %v1235_v50 = vsel %vm1234_vm15, %v1641_v58, %v1231_v26 }
 0xe62   :  { %v1240_v52 = vsel %vm1237_vm1, %v1239_v48, %v1235_v50 }
 0xe63   :  { %v1260_v8 = vmul.f32 %v1240_v52, %v2149_v0 }
 0xe84   :  { %v1162_v30 = vpop.permute.xlu2 %1161 }
 0xe85   :  { %v1164_v33 = vmul.f32 %v1162_v30, %v1157_v31  ;;  %v1278_v30 = vld [vmem:[#allocation6 + $0x38] sm:$0xff] }
 0xe87   :  { %1166 = vrot.lane.b32.xlu1 %v1164_v33, %s1792_s13 }
 0xeb9   :  { %v1245_v51 = vpop.permute.xlu0 %1244 }
 0xeba   :  { %v1247_v56 = vmul.f32 %v1245_v51, %v1240_v52 }
 0xebc   :  { %1249 = vrot.lane.b32.xlu2 %v1247_v56, %s1792_s13 }
 0xec4   :  { %1183 = vperm.xlu2 %1558, %v1991_v27  }
 0xef9   :  { %v1167_v57 = vpop.permute.xlu1 %1166 }
 0xefa   :  { %v1169_v24 = vadd.f32 %v1167_v57, %v1112_v2 }
 0xefc   :  { %1642 = vtanh.f32 %v1169_v24 }
 0xf02   :  { %v1643_v59 = vpop.eup %1642 }
 0xf03   :  { %1173 = vrot.lane.b32.xlu0 %v1643_v59, %s1795_s0 }
 0xf0b   :  { %1266 = vperm.xlu0 %1559, %v1985_v19   ;;  %v1254_v19 = vsub.f32 1.0, %v1240_v52 }
 0xf16   :  { %v1250_v60 = vpop.permute.xlu2 %1249 }
 0xf17   :  { %v1252_v38 = vadd.f32 %v1250_v60, %v1195_v32  ;;  %v1360_v32 = vld [vmem:[#allocation8] sm:$0xff] }
 0xf19   :  { %1644 = vtanh.f32 %v1252_v38 }
 0xf1e   :  { %v1184_v1 = vpop.permute.xlu2 %1183 }
 0xf1f   :  { %v1645_v9 = vpop.eup %1644  ;;  %vm1185_vm2 = vcmp.eq.s32.totalorder %v1184_v1, 1 }
 0xf20   :  { %1256 = vrot.lane.b32.xlu1 %v1645_v9, %s1795_s0 }
 0xf75   :  { %v1174_v44 = vpop.permute.xlu0 %1173 }
 0xf76   :  { %v1176_v27 = vmul.f32 %v1174_v44, %v1171_v35 }
 0xf78   :  { %v1178_v17 = vadd.f32 %v1177_v11, %v1176_v27 }
 0xf7a   :  { %v2169_v2 = vsel %vm1185_vm2, %v1178_v17, %v2141_v23  ;;  %v2171_v4 = vsel %vm1185_vm2, %v1178_v17, 0.0 }
 0xf7b   :  { %1281 = vrot.lane.b32.xlu1 %v2169_v2, %s1795_s0 }
 0xf7d   :  { %v1267_v20 = vpop.permute.xlu0 %1266 }
 0xf7e   :  { %vm1268_vm3 = vcmp.eq.s32.totalorder %v1267_v20, 1 }
 0xf92   :  { %v1257_v3 = vpop.permute.xlu1 %1256 }
 0xf93   :  { %v1259_v54 = vmul.f32 %v1257_v3, %v1254_v19 }
 0xf95   :  { %v1261_v6 = vadd.f32 %v1260_v8, %v1259_v54 }
 0xf97   :  { %v2177_v21 = vsel %vm1268_vm3, %v1261_v6, %v2149_v0  ;;  %v2179_v10 = vsel %vm1268_vm3, %v1261_v6, 0.0 }
 0xf98   :  { %1362 = vrot.lane.b32.xlu2 %v2177_v21, %s1795_s0 }
 0xfed   :  { %v1282_v23 = vpop.permute.xlu1 %1281 }
 0xfee   :  { %1539 = vmatmul.msk.f32.vlgmr.msrb.gmra.mxu2 %vm83_vm0, %v1282_v23 }
 0xff2   :  { %v1363_v15 = vpop.permute.xlu2 %1362 }
 0xff3   :  { %1542 = vmatmul.msk.f32.vlgmr.msrb.gmra.mxu3 %vm83_vm0, %v1363_v15 }
0x1071   :  { %v1302_v61 = vpop.f32.mrf.mxu2 }
0x1072   :  { %v1325_v28 = vadd.f32 %v1302_v61, %v1922_v13  ;;  %v1305_v31 = vadd.f32 %v1302_v61, %v1278_v30 }
0x1074   :  { %1327 = vrot.lane.b32.xlu0 %v1325_v28, %s1792_s13  ;;  %v1540_v33 = vmul.f32 -1.442695, %v1305_v31 }
0x1076   :  { %v1383_v29 = vpop.f32.mrf.mxu3  ;;  %1646 = vpow2.f32 %v1540_v33 }
0x1077   :  { %v1406_v0 = vadd.f32 %v1383_v29, %v1926_v16  ;;  %v1386_v34 = vadd.f32 %v1383_v29, %v1360_v32 }
0x1079   :  { %1408 = vrot.lane.b32.xlu1 %v1406_v0, %s1792_s13  ;;  %v1543_v37 = vmul.f32 -1.442695, %v1386_v34 }
0x107b   :  { %1648 = vpow2.f32 %v1543_v37 }
0x107c   :  { %v1647_v14 = vpop.eup %1646 }
0x107d   :  { %v1309_v40 = vadd.f32 1.0, %v1647_v14 }
0x107f   :  { %1650 = vrcp.f32 %v1309_v40  ;;  %v1321_v50 = vand.u32 2147483648, %v1309_v40  ;;  %vm1315_vm5 = vweird.f32 %v1309_v40  ;;  %v1319_v51 = vand.u32 2147483647, %v1309_v40 }
0x1081   :  { %1430 = vperm.xlu1 %1557, %v1941_v55   ;;  %v1649_v13 = vpop.eup %1648  ;;  %v1322_v56 = vor.u32 1.1754944e-38, %v1321_v50  ;;  %vm1320_vm8 = vcmp.eq.f32.partialorder %v1319_v51, 8.507059e+37 }
0x1082   :  { %v1390_v58 = vadd.f32 1.0, %v1649_v13 }
0x1084   :  { %1652 = vrcp.f32 %v1390_v58  ;;  %v1402_v24 = vand.u32 2147483648, %v1390_v58  ;;  %vm1396_vm9 = vweird.f32 %v1390_v58  ;;  %v1400_v38 = vand.u32 2147483647, %v1390_v58 }
0x1085   :  { %v1651_v41 = vpop.eup %1650 }
0x1086   :  { %v1311_v16 = vmul.f32 %v1651_v41, %v1309_v40  ;;  %vm1316_vm4 = vweird.f32 %v1651_v41  ;;  %v1403_v44 = vor.u32 1.1754944e-38, %v1402_v24  ;;  %vm1401_vm11 = vcmp.eq.f32.partialorder %v1400_v38, 8.507059e+37 }
0x1087   :  { %vm1317_vm6 = vmor %vm1315_vm5, %vm1316_vm4 }
0x1088   :  { %v1312_v45 = vsub.f32 1.0, %v1311_v16 }
0x108a   :  { %v1653_v53 = vpop.eup %1652  ;;  %v1313_v55 = vmul.f32 %v1651_v41, %v1312_v45 }
0x108b   :  { %v1392_v26 = vmul.f32 %v1653_v53, %v1390_v58  ;;  %vm1397_vm7 = vweird.f32 %v1653_v53 }
0x108c   :  { %v1314_v47 = vadd.f32 %v1651_v41, %v1313_v55  ;;  %vm1398_vm10 = vmor %vm1396_vm9, %vm1397_vm7 }
0x108d   :  { %v1393_v46 = vsub.f32 1.0, %v1392_v26 }
0x108e   :  { %v1318_v52 = vsel %vm1317_vm6, %v1651_v41, %v1314_v47 }
0x108f   :  { %v1394_v48 = vmul.f32 %v1653_v53, %v1393_v46  ;;  %v1323_v60 = vsel %vm1320_vm8, %v1322_v56, %v1318_v52 }
0x1090   :  { %v1343_v8 = vmul.f32 %v1323_v60, %v2169_v2 }
0x1091   :  { %v1395_v57 = vadd.f32 %v1653_v53, %v1394_v48 }
0x1093   :  { %v1399_v35 = vsel %vm1398_vm10, %v1653_v53, %v1395_v57 }
0x1094   :  { %v1404_v1 = vsel %vm1401_vm11, %v1403_v44, %v1399_v35 }
0x10e6   :  { %v1328_v59 = vpop.permute.xlu0 %1327 }
0x10e7   :  { %v1330_v9 = vmul.f32 %v1328_v59, %v1323_v60 }
0x10e9   :  { %1332 = vrot.lane.b32.xlu2 %v1330_v9, %s1792_s13 }
0x10eb   :  { %v1409_v11 = vpop.permute.xlu1 %1408 }
0x10ec   :  { %v1411_v27 = vmul.f32 %v1409_v11, %v1404_v1 }
0x10ee   :  { %1413 = vrot.lane.b32.xlu0 %v1411_v27, %s1792_s13 }
0x10f6   :  { %1349 = vperm.xlu0 %1559, %v1952_v62  }
0x10fe   :  { %276 = vrot.lane.b32.xlu0 %v1961_v25, %s1795_s0 }
0x1106   :  { %525 = vrot.lane.b32.xlu0 %v2043_v63, %s1795_s0 }
0x110e   :  { %774 = vrot.lane.b32.xlu0 %v2092_v22, %s1795_s0 }
0x1116   :  { %1023 = vrot.lane.b32.xlu0 %v2143_v49, %s1795_s0 }
0x111e   :  { %1272 = vrot.lane.b32.xlu0 %v2179_v10, %s1795_s0 }
0x1143   :  { %v1333_v17 = vpop.permute.xlu2 %1332 }
0x1144   :  { %v1335_v19 = vadd.f32 %v1333_v17, %v1278_v30 }
0x1146   :  { %1654 = vtanh.f32 %v1335_v19 }
0x114c   :  { %v1655_v3 = vpop.eup %1654 }
0x114d   :  { %1339 = vrot.lane.b32.xlu1 %v1655_v3, %s1795_s0 }
0x1155   :  { %359 = vrot.lane.b32.xlu1 %v1999_v36, %s1795_s0 }
0x115d   :  { %608 = vrot.lane.b32.xlu1 %v2048_v12, %s1795_s0 }
0x1160   :  { %v1414_v62 = vpop.permute.xlu0 %1413 }
0x1161   :  { %v1416_v25 = vadd.f32 %v1414_v62, %v1360_v32 }
0x1163   :  { %1656 = vtanh.f32 %v1416_v25 }
0x1165   :  { %857 = vrot.lane.b32.xlu1 %v2115_v39, %s1795_s0 }
0x1168   :  { %v1350_v63 = vpop.permute.xlu0 %1349 }
0x1169   :  { %v1657_v22 = vpop.eup %1656  ;;  %vm1351_vm12 = vcmp.eq.s32.totalorder %v1350_v63, 1 }
0x116a   :  { %1420 = vrot.lane.b32.xlu2 %v1657_v22, %s1795_s0 }
0x116d   :  { %1106 = vrot.lane.b32.xlu1 %v2151_v7, %s1795_s0 }
0x1170   :  { %v277_v49 = vpop.permute.xlu0 %276 }
0x1171   :  { %280 = vst.msk [vmem:[#allocation10 + $0x38] sm:$0xff] %vm83_vm0, %v277_v49 }
0x1172   :  { %190 = vrot.lane.b32.xlu2 %v1955_v18, %s1795_s0  ;;  %v1431_v18 = vpop.permute.xlu1 %1430 }
0x1173   :  { %vm1432_vm13 = vcmp.eq.s32.totalorder %v1431_v18, 1 }
0x1178   :  { %v526_v36 = vpop.permute.xlu0 %525 }
0x1179   :  { %529 = vst.msk [vmem:[#allocation9 + $0x10] sm:$0xff] %vm83_vm0, %v526_v36 }
0x117a   :  { %442 = vrot.lane.b32.xlu2 %v2004_v43, %s1795_s0  ;;  %v1337_v43 = vsub.f32 1.0, %v1323_v60 }
0x1180   :  { %v775_v12 = vpop.permute.xlu0 %774 }
0x1181   :  { %778 = vst.msk [vmem:[#allocation10 + $0x20] sm:$0xff] %vm83_vm0, %v775_v12 }
0x1182   :  { %691 = vrot.lane.b32.xlu2 %v2087_v5, %s1795_s0  ;;  %v1418_v5 = vsub.f32 1.0, %v1404_v1 }
0x1188   :  { %v1024_v39 = vpop.permute.xlu0 %1023 }
0x1189   :  { %1027 = vst.msk [vmem:[#allocation9 + $0x28] sm:$0xff] %vm83_vm0, %v1024_v39 }
0x118a   :  { %940 = vrot.lane.b32.xlu2 %v2120_v42, %s1795_s0  ;;  %v1424_v42 = vmul.f32 %v1404_v1, %v2177_v21 }
0x1190   :  { %v1273_v7 = vpop.permute.xlu0 %1272 }
0x1191   :  { %1276 = vst.msk [vmem:[#allocation10 + $0x8] sm:$0xff] %vm83_vm0, %v1273_v7 }
0x1192   :  { %1189 = vrot.lane.b32.xlu2 %v2171_v4, %s1795_s0 }
0x11bf   :  { %v1340_v20 = vpop.permute.xlu1 %1339 }
0x11c0   :  { %v1342_v54 = vmul.f32 %v1340_v20, %v1337_v43 }
0x11c2   :  { %v1344_v6 = vadd.f32 %v1343_v8, %v1342_v54 }
0x11c4   :  { %v1421_v10 = vpop.permute.xlu2 %1420  ;;  %v1353_v23 = vsel %vm1351_vm12, %v1344_v6, 0.0  ;;  %v1352_v15 = vsel %vm1351_vm12, %v1344_v6, %v2169_v2 }
0x11c5   :  { %v1423_v61 = vmul.f32 %v1421_v10, %v1418_v5  ;;  %1355 = vrot.lane.b32.xlu1 %v1353_v23, %s1795_s0  ;;  %1441 = vrot.lane.b32.xlu0 %v1352_v15, %s1795_s0 }
0x11c7   :  { %v1425_v4 = vadd.f32 %v1424_v42, %v1423_v61  ;;  %v360_v28 = vpop.permute.xlu1 %359 }
0x11c8   :  { %363 = vst.msk [vmem:[#allocation9 + $0x8] sm:$0xff] %vm83_vm0, %v360_v28 }
0x11c9   :  { %v1434_v29 = vsel %vm1432_vm13, %v1425_v4, 0.0  ;;  %v1433_v30 = vsel %vm1432_vm13, %v1425_v4, %v2177_v21 }
0x11ca   :  { %1436 = vrot.lane.b32.xlu2 %v1434_v29, %s1795_s0 }
0x11cc   :  { %v191_v0 = vpop.permute.xlu2 %190 }
0x11cd   :  { %193 = vst.msk [vmem:[#allocation9] sm:$0xff] %vm83_vm0, %v191_v0  ;;  %1446 = vrot.lane.b32.xlu1 %v1433_v30, %s1795_s0 }
0x11cf   :  { %v609_v2 = vpop.permute.xlu1 %608 }
0x11d0   :  { %612 = vst.msk [vmem:[#allocation10 + $0x28] sm:$0xff] %vm83_vm0, %v609_v2 }
0x11d4   :  { %v443_v31 = vpop.permute.xlu2 %442 }
0x11d5   :  { %446 = vst.msk [vmem:[#allocation10 + $0x30] sm:$0xff] %vm83_vm0, %v443_v31 }
0x11d7   :  { %v858_v32 = vpop.permute.xlu1 %857 }
0x11d8   :  { %861 = vst.msk [vmem:[#allocation9 + $0x20] sm:$0xff] %vm83_vm0, %v858_v32 }
0x11dc   :  { %v692_v33 = vpop.permute.xlu2 %691 }
0x11dd   :  { %695 = vst.msk [vmem:[#allocation9 + $0x18] sm:$0xff] %vm83_vm0, %v692_v33 }
0x11df   :  { %v1107_v34 = vpop.permute.xlu1 %1106 }
0x11e0   :  { %1110 = vst.msk [vmem:[#allocation10 + $0x10] sm:$0xff] %vm83_vm0, %v1107_v34 }
0x11e4   :  { %v941_v21 = vpop.permute.xlu2 %940 }
0x11e5   :  { %944 = vst.msk [vmem:[#allocation10 + $0x18] sm:$0xff] %vm83_vm0, %v941_v21 }
0x11ec   :  { %v1190_v37 = vpop.permute.xlu2 %1189 }
0x11ed   :  { %1193 = vst.msk [vmem:[#allocation9 + $0x30] sm:$0xff] %vm83_vm0, %v1190_v37 }
0x1224   :  { %v1437_v14 = vpop.permute.xlu2 %1436 }
0x1225   :  { %1439 = vst.msk [vmem:[#allocation10] sm:$0xff] %vm83_vm0, %v1437_v14 }
0x1226   :  { %1479 = dma.vmem_to_hbm [thread:$0]  %s1472_s19, 1024, %s1474_s22, [#allocation11], %s1787_s29, %s1787_s29, %s1788_s30  }
0x1237   :  { %v1442_v40 = vpop.permute.xlu0 %1441  ;;  %v1356_v13 = vpop.permute.xlu1 %1355 }
0x1238   :  { %1444 = vst.msk [vmem:[#allocation2] sm:$0xff] %vm83_vm0, %v1442_v40 }
0x1239   :  { %1359 = vst.msk [vmem:[#allocation9 + $0x38] sm:$0xff] %vm83_vm0, %v1356_v13 }
0x123a   :  { %1462 = dma.vmem_to_hbm [thread:$0]  %s1455_s24, 1024, %s1457_s27, [#allocation5], %s1787_s29, %s1787_s29, %s1788_s30  }
0x123f   :  { %v1447_v58 = vpop.permute.xlu1 %1446 }
0x1240   :  { %1449 = vst.msk [vmem:[#allocation2 + $0x8] sm:$0xff] %vm83_vm0, %v1447_v58 }
0x1241   :  { %1782 = dma.done.wait [#allocation5], 1024  }
0x1242   :  { %1783 = vsyncadd [#allocation5], 4294966272 }
0x1243   :  { %1784 = dma.done.wait [#allocation11], 1024  }
0x1244   :  { %1785 = vsyncadd [#allocation11], 4294966272 }
0x1245   :  { %1488 = vsyncpa [#allocation4], 1 }
0x1246   :  { %1489 = vsyncpa [#allocation7], 1 }
0x1247   :  { %1490 = vsyncpa [#allocation5], 1 }
0x1248   :  { %1491 = vsyncpa [#allocation11], 1 }

</bundles_post_ra>
